<compile_context>
chip_gen: v7x
topology: tpu7x:2x2x1
jax: 0.10.0
libtpu: 0.0.40
codegen_flags: <defaults>
</compile_context>

<pallas_src>
import math
import functools

import jax
import jax.numpy as jnp
from jax import lax
from jax.experimental import pallas as pl
from jax.experimental.pallas import tpu as pltpu

NEG_INF = -1e30            # Python float (no captured jnp constant in the kernel)
LN_EPS = 1e-5              # torch.nn.LayerNorm default
_GELU_C = math.sqrt(2.0 / math.pi)


# ----------------------------------------------------------------------------
# Pallas kernel: full layer stack, Bt batch elements per outer grid step,
# layer index on the inner ("arbitrary") grid axis; the activation carry lives
# in the revisited output block.
# ----------------------------------------------------------------------------
def transformer_stack_kernel(
    x_ref,        # (Bt, S, D)  f32 embedded tokens (read only at layer 0)
    pm_ref,       # (Bt, 1, S)  f32 padding mask, 1.0 where token == padding_idx
    qkvw_ref,     # (1, D, 3D)  bf16 fused q/k/v weight
    ow_ref,       # (1, D, D)   bf16 out-proj weight
    fw1_ref,      # (1, D, 4D)  bf16
    fw2_ref,      # (1, 4D, D)  bf16
    qkvb_ref,     # (1, 1, 3D)  f32
    fb1_ref,      # (1, 1, 4D)  f32
    small_ref,    # (1, 6, D)   f32: [out_b, ff_b2, ln1_g, ln1_b, ln2_g, ln2_b]
    o_ref,        # (Bt, S, D)  f32 activation carry + final output
    mask_ref,     # VMEM scratch (Bt, S, S) f32 additive causal+padding mask
    *,
    n_heads: int,
    batch_block: int,
):
    f32, bf16 = jnp.float32, jnp.bfloat16
    bt = batch_block
    _, S, D = x_ref.shape
    H = n_heads
    hd = D // H
    rows = bt * S
    scale = 1.0 / math.sqrt(hd)
    layer = pl.program_id(1)

    pm = pm_ref[...].astype(f32)                        # (bt, 1, S)

    @pl.when(layer == 0)
    def _():
        # Load the embedded input into the (revisited) output block, which acts as
        # the cross-layer activation carry, and build the additive mask ONCE.
        o_ref[...] = x_ref[...].astype(f32)
        row = lax.broadcasted_iota(jnp.int32, (S, S), 0)
        col = lax.broadcasted_iota(jnp.int32, (S, S), 1)
        future = (col > row)[None, :, :]                # (1, S, S) causal
        mask_ref[...] = jnp.where(jnp.logical_or(future, pm > 0.0), NEG_INF, 0.0)

    x = o_ref[...].reshape(rows, D)                     # (bt*S, D) f32 carry
    xb = x.astype(bf16)
    mask = mask_ref[...]                                # (bt, S, S) f32
    live = 1.0 - jnp.min(pm, axis=-1, keepdims=True)    # (bt, 1, 1): 0 iff all pad

    # ---- fused QKV projection: one (bt*S, D) @ (D, 3D) bf16 matmul, f32 accum ----
    qkv = jnp.dot(xb, qkvw_ref[0], preferred_element_type=f32) + qkvb_ref[0]
    q = (qkv[:, 0 * D:1 * D] * scale).reshape(bt, S, D).astype(bf16)
    k = qkv[:, 1 * D:2 * D].reshape(bt, S, D).astype(bf16)
    v = qkv[:, 2 * D:3 * D].reshape(bt, S, D).astype(bf16)

    # ---- multi-head attention, batched over the bt sequences of this block ----
    ctx_heads = []
    for h in range(H):
        qh = q[:, :, h * hd:(h + 1) * hd]
        kh = k[:, :, h * hd:(h + 1) * hd]
        vh = v[:, :, h * hd:(h + 1) * hd]
        s = lax.dot_general(qh, kh, (((2,), (2,)), ((0,), (0,))),
                            preferred_element_type=f32) + mask          # (bt, S, S)
        m = jnp.max(s, axis=-1, keepdims=True)
        e = jnp.exp(s - m)
        p = e * pl.reciprocal(jnp.sum(e, axis=-1, keepdims=True), approx=True)
        ctx_heads.append(lax.dot_general(p.astype(bf16), vh,
                                         (((2,), (1,)), ((0,), (0,))),
                                         preferred_element_type=f32))   # (bt, S, hd)
    ctx = jnp.concatenate(ctx_heads, axis=-1) * live                    # (bt, S, D)
    ctx = ctx.reshape(rows, D).astype(bf16)

    small = small_ref[0]                                # (6, D) f32
    out_b, ff_b2 = small[0:1], small[1:2]
    ln1_g, ln1_b = small[2:3], small[3:4]
    ln2_g, ln2_b = small[4:5], small[5:6]

    attn = jnp.dot(ctx, ow_ref[0], preferred_element_type=f32) + out_b  # (bt*S, D)
    # full_attn = attn / n_attn with n_attn == 1 (no encoder contexts)

    def layer_norm(y, g, b):
        mu = jnp.mean(y, axis=-1, keepdims=True)
        var = jnp.mean((y - mu) ** 2, axis=-1, keepdims=True)
        return (y - mu) * lax.rsqrt(var + LN_EPS) * g + b

    x1 = layer_norm(x + attn, ln1_g, ln1_b)

    # ---- feed-forward with tanh-approx GELU (exact formula from FeedForward.gelu) --
    h1 = jnp.dot(x1.astype(bf16), fw1_ref[0], preferred_element_type=f32) + fb1_ref[0]
    g = 0.5 * h1 * (1.0 + jnp.tanh(_GELU_C * (h1 + 0.044715 * h1 * h1 * h1)))
    f = jnp.dot(g.astype(bf16), fw2_ref[0], preferred_element_type=f32) + ff_b2

    x2 = layer_norm(x1 + f, ln2_g, ln2_b)
    o_ref[...] = x2.reshape(bt, S, D)                   # carry / final output (f32)


# ----------------------------------------------------------------------------
# Wrapper: whole layer stack in ONE pallas_call, batch blocked per grid step
# ----------------------------------------------------------------------------
def transformer_stack(x, pm, layer_params, n_heads, batch_block=None):
    B, S, D = x.shape
    L = len(layer_params)
    assert D % 128 == 0 and S % 8 == 0 and D % n_heads == 0

    if batch_block is None:
        # Pack enough sequences per step to fill MXU rows (target ~256).  With more
        # than one batch block the leading "parallel" axis also shards across the
        # two v7x TensorCores.
        batch_block = max(1, min(B, max(1, 256 // S)))
        while B % batch_block:
            batch_block -= 1
    bt = batch_block
    nb = B // bt

    bf16, f32 = jnp.bfloat16, jnp.float32
    qkv_w = jnp.stack([p["qkv_w"] for p in layer_params]).astype(bf16)   # (L, D, 3D)
    out_w = jnp.stack([p["out_w"] for p in layer_params]).astype(bf16)   # (L, D, D)
    ff_w1 = jnp.stack([p["ff_w1"] for p in layer_params]).astype(bf16)   # (L, D, 4D)
    ff_w2 = jnp.stack([p["ff_w2"] for p in layer_params]).astype(bf16)   # (L, 4D, D)
    qkv_b = jnp.stack([p["qkv_b"] for p in layer_params]).astype(f32)    # (L, 1, 3D)
    ff_b1 = jnp.stack([p["ff_b1"] for p in layer_params]).astype(f32)    # (L, 1, 4D)
    small = jnp.stack([jnp.concatenate(
        [p["out_b"], p["ff_b2"], p["ln1_g"], p["ln1_b"], p["ln2_g"], p["ln2_b"]],
        axis=0) for p in layer_params]).astype(f32)                      # (L, 6, D)
    weights = [qkv_w, out_w, ff_w1, ff_w2, qkv_b, ff_b1, small]

    def wspec(arr):
        return pl.BlockSpec((1,) + tuple(arr.shape[1:]), lambda b, l: (l, 0, 0))

    # VMEM budget derived from actual double-buffered blocks + scratch + matmul
    # intermediates; capped at 48 MiB so it also fits v7x's 64 MiB physical VMEM.
    def nbytes(shape, itemsize):
        return math.prod(shape) * itemsize

    blk = 2 * (nbytes((bt, S, D), 4) + nbytes((bt, 1, S), 4) + nbytes((bt, S, D), 4)
               + sum(nbytes(tuple(w.shape[1:]), w.dtype.itemsize) for w in weights))
    scratch = nbytes((bt, S, max(S, 128)), 4)
    interm = (nbytes((bt * S, 3 * D), 4) + 3 * nbytes((bt * S, D), 2)
              + 4 * nbytes((bt, S, max(S, 128)), 4)
              + 2 * nbytes((bt * S, 4 * D), 4) + 2 * nbytes((bt * S, D), 4))
    vmem_limit = min(int(blk + scratch + 2 * interm) + (8 << 20), 48 << 20)

    kernel = functools.partial(transformer_stack_kernel,
                               n_heads=n_heads, batch_block=bt)
    return pl.pallas_call(
        kernel,
        out_shape=jax.ShapeDtypeStruct((B, S, D), jnp.float32),
        grid=(nb, L),
        in_specs=[pl.BlockSpec((bt, S, D), lambda b, l: (b, 0, 0)),
                  pl.BlockSpec((bt, 1, S), lambda b, l: (b, 0, 0))]
                 + [wspec(w) for w in weights],
        out_specs=pl.BlockSpec((bt, S, D), lambda b, l: (b, 0, 0)),
        scratch_shapes=[pltpu.VMEM((bt, S, S), jnp.float32)],
        input_output_aliases={0: 0},
        compiler_params=pltpu.CompilerParams(
            dimension_semantics=("parallel", "arbitrary"),
            vmem_limit_bytes=vmem_limit),
    )(x.astype(jnp.float32), pm, *weights)


# ----------------------------------------------------------------------------
# Full TransformerModule forward (embedding gathers are plain-JAX glue)
# ----------------------------------------------------------------------------
def transformer_module_forward(tokens, params, *, padding_idx, n_heads,
                               gender=None, loc=None, tag=None):
    padding_mask = tokens == padding_idx                                 # (B, S) bool
    positions = jnp.cumsum((~padding_mask).astype(jnp.int32), axis=-1)
    positions = jnp.where(padding_mask, 0, positions)                    # pos pad idx 0

    D = params["tok_emb"].shape[1]
    h = params["tok_emb"][tokens] * math.sqrt(D) + params["pos_emb"][positions]
    if gender is not None:
        h = h + params["gender_emb"][gender]
    if loc is not None:
        h = h + params["loc_emb"][loc]
    if tag is not None:
        h = h + params["tag_emb"][tag]
    # embed_dropout: identity at inference

    pm = padding_mask.astype(jnp.float32)[:, None, :]                    # (B, 1, S)
    h = transformer_stack(h.astype(jnp.float32), pm, params["layers"], n_heads)
    return h, padding_mask


# ----------------------------------------------------------------------------
# Deterministic parameter init (module shapes; std=0.02 normals)
# ----------------------------------------------------------------------------
def init_params(key, *, n_layers, n_embeddings, n_pos_embeddings, D,
                n_gender=3, n_loc=37, n_tag=502):
    keys = iter(jax.random.split(key, 5 + 8 * n_layers))

    def nrm(shape, std=0.02):
        return jax.random.normal(next(keys), shape, jnp.float32) * std

    params = {
        "tok_emb": nrm((n_embeddings, D)),
        "pos_emb": nrm((n_pos_embeddings + 1, D)),
        "gender_emb": nrm((n_gender, D)),
        "loc_emb": nrm((n_loc, D)),
        "tag_emb": nrm((n_tag, D)),
        "layers": [],
    }
    for _ in range(n_layers):
        # Linear weights stored pre-transposed: (in_features, out_features);
        # qkv_proj kept fused as in the PyTorch module.
        params["layers"].append({
            "qkv_w": nrm((D, 3 * D)), "qkv_b": nrm((1, 3 * D)),
            "out_w": nrm((D, D)),     "out_b": nrm((1, D)),
            "ln1_g": jnp.ones((1, D), jnp.float32),
            "ln1_b": jnp.zeros((1, D), jnp.float32),
            "ff_w1": nrm((D, 4 * D)), "ff_b1": nrm((1, 4 * D)),
            "ff_w2": nrm((4 * D, D)), "ff_b2": nrm((1, D)),
            "ln2_g": jnp.ones((1, D), jnp.float32),
            "ln2_b": jnp.zeros((1, D), jnp.float32),
        })
    return params


# ----------------------------------------------------------------------------
# Pure-JAX f32 reference (mirrors the PyTorch forward) for a correctness check
# ----------------------------------------------------------------------------
def _ref_block(x, pad, p, n_heads):
    B, S, D = x.shape
    hd = D // n_heads
    qkv = x @ p["qkv_w"] + p["qkv_b"]
    q, k, v = jnp.split(qkv, 3, axis=-1)

    def split(t):
        return t.reshape(B, S, n_heads, hd).transpose(0, 2, 1, 3)

    q, k, v = split(q), split(k), split(v)
    s = (q @ k.transpose(0, 1, 3, 2)) / math.sqrt(hd)
    fut = jnp.triu(jnp.ones((S, S), bool), 1)
    s = jnp.where(fut[None, None], NEG_INF, s)
    s = jnp.where(pad[:, None, None, :], NEG_INF, s)
    w = jax.nn.softmax(s, axis=-1)
    w = jnp.where(jnp.all(pad, axis=-1)[:, None, None, None], 0.0, w)
    ctx = (w @ v).transpose(0, 2, 1, 3).reshape(B, S, D)
    a = ctx @ p["out_w"] + p["out_b"]

    def ln(y, g, b):
        mu = y.mean(-1, keepdims=True)
        var = ((y - mu) ** 2).mean(-1, keepdims=True)
        return (y - mu) / jnp.sqrt(var + LN_EPS) * g + b

    x1 = ln(x + a, p["ln1_g"], p["ln1_b"])
    h1 = x1 @ p["ff_w1"] + p["ff_b1"]
    g = 0.5 * h1 * (1 + jnp.tanh(_GELU_C * (h1 + 0.044715 * h1 ** 3)))
    f = g @ p["ff_w2"] + p["ff_b2"]
    return ln(x1 + f, p["ln2_g"], p["ln2_b"])


def _ref_forward(tokens, params, *, padding_idx, n_heads):
    pad = tokens == padding_idx
    positions = jnp.cumsum((~pad).astype(jnp.int32), axis=-1)
    positions = jnp.where(pad, 0, positions)
    D = params["tok_emb"].shape[1]
    h = params["tok_emb"][tokens] * math.sqrt(D) + params["pos_emb"][positions]
    for p in params["layers"]:
        h = _ref_block(h, pad, p, n_heads)
    return h


# ----------------------------------------------------------------------------
if __name__ == "__main__":
    # D multiple of 128 -> lane-dense output stores, lane-aligned q/k/v slices
    B, S, D = 2, 16, 128
    n_layers, n_heads = 2, 4
    vocab, n_pos, padding_idx = 50, S, 0

    key = jax.random.PRNGKey(0)
    params = init_params(key, n_layers=n_layers, n_embeddings=vocab,
                         n_pos_embeddings=n_pos, D=D)

    tokens = jax.random.randint(jax.random.fold_in(key, 123), (B, S), 1, vocab)
    lengths = jnp.array([S, S - 5])                 # second sequence has 5 pads
    tokens = jnp.where(jnp.arange(S)[None, :] < lengths[:, None],
                       tokens, padding_idx).astype(jnp.int32)

    fwd = jax.jit(functools.partial(transformer_module_forward,
                                    padding_idx=padding_idx, n_heads=n_heads))
    out, pad_mask = fwd(tokens, params)
    out = jax.block_until_ready(out)

    ref = _ref_forward(tokens, params, padding_idx=padding_idx, n_heads=n_heads)
    assert out.shape == (B, S, D) and pad_mask.shape == (B, S)
    # Tolerance covers bf16 matmul operands (f32 accumulation) and the EUP
    # approximate-reciprocal softmax normalization vs the pure-f32 reference.
    assert jnp.allclose(out, ref, atol=5e-2, rtol=5e-2), "mismatch vs JAX reference"

    print("KERNEL_OK")
</pallas_src>

<mosaic_0001>
module attributes {stable_mosaic.version = 11 : i64} {
  func.func @transformer_stack_kernel(%arg0: i32, %arg1: i32, %arg2: memref<2x16x128xf32, #tpu.memory_space<vmem>>, %arg3: memref<2x1x16xf32, #tpu.memory_space<vmem>>, %arg4: memref<1x128x384xbf16, #tpu.memory_space<vmem>>, %arg5: memref<1x128x128xbf16, #tpu.memory_space<vmem>>, %arg6: memref<1x128x512xbf16, #tpu.memory_space<vmem>>, %arg7: memref<1x512x128xbf16, #tpu.memory_space<vmem>>, %arg8: memref<1x1x384xf32, #tpu.memory_space<vmem>>, %arg9: memref<1x1x512xf32, #tpu.memory_space<vmem>>, %arg10: memref<1x6x128xf32, #tpu.memory_space<vmem>>, %arg11: memref<2x16x128xf32, #tpu.memory_space<vmem>>, %arg12: memref<2x16x16xf32, #tpu.memory_space<vmem>>) attributes {dimension_semantics = [#tpu.dimension_semantics<parallel>, #tpu.dimension_semantics<arbitrary>], iteration_bounds = array<i64: 1, 2>, scalar_prefetch = 0 : i64, scratch_operands = 1 : i64, tpu.core_type = #tpu.core_type<tc>, window_params = [{transform_indices = @transform_0, window_bounds = array<i64: 2, 16, 128>}, {transform_indices = @transform_1, window_bounds = array<i64: 2, 1, 16>}, {transform_indices = @transform_2, window_bounds = array<i64: 1, 128, 384>}, {transform_indices = @transform_3, window_bounds = array<i64: 1, 128, 128>}, {transform_indices = @transform_4, window_bounds = array<i64: 1, 128, 512>}, {transform_indices = @transform_5, window_bounds = array<i64: 1, 512, 128>}, {transform_indices = @transform_6, window_bounds = array<i64: 1, 1, 384>}, {transform_indices = @transform_7, window_bounds = array<i64: 1, 1, 512>}, {transform_indices = @transform_8, window_bounds = array<i64: 1, 6, 128>}, {transform_indices = @transform_9, window_bounds = array<i64: 2, 16, 128>}]} {
    %c0 = arith.constant 0 : index
    %c0_0 = arith.constant 0 : index
    %c0_1 = arith.constant 0 : index
    %0 = vector.load %arg3[%c0, %c0_0, %c0_1] : memref<2x1x16xf32, #tpu.memory_space<vmem>>, vector<2x1x16xf32>
    %c0_i32 = arith.constant 0 : i32
    %1 = arith.cmpi eq, %arg1, %c0_i32 : i32
    %2 = arith.extui %1 : i1 to i32
    %c0_i32_2 = arith.constant 0 : i32
    %3 = arith.cmpi ne, %2, %c0_i32_2 : i32
    scf.if %3 {
      %c0_69 = arith.constant 0 : index
      %c0_70 = arith.constant 0 : index
      %c0_71 = arith.constant 0 : index
      %191 = vector.load %arg2[%c0_69, %c0_70, %c0_71] : memref<2x16x128xf32, #tpu.memory_space<vmem>>, vector<2x16x128xf32>
      %c0_72 = arith.constant 0 : index
      %c0_73 = arith.constant 0 : index
      %c0_74 = arith.constant 0 : index
      %192 = vector.load %arg11[%c0_72, %c0_73, %c0_74] : memref<2x16x128xf32, #tpu.memory_space<vmem>>, vector<2x16x128xf32>
      tpu.vector_store %arg11[%c0_72, %c0_73, %c0_74], %191 {strides = array<i32>} : memref<2x16x128xf32, #tpu.memory_space<vmem>>, vector<2x16x128xf32>,
      %193 = tpu.iota {dimensions = array<i32: 0>} : vector<16x16xi32>
      %194 = tpu.iota {dimensions = array<i32: 1>} : vector<16x16xi32>
      %195 = arith.cmpi sgt, %194, %193 : vector<16x16xi32>
      %196 = vector.shape_cast %195 : vector<16x16xi1> to vector<1x16x16xi1>
      %cst_75 = arith.constant 0.000000e+00 : f32
      %197 = vector.broadcast %cst_75 : f32 to vector<2x1x16xf32>
      %198 = arith.cmpf ogt, %0, %197 : vector<2x1x16xf32>
      %199 = vector.broadcast %196 : vector<1x16x16xi1> to vector<2x16x16xi1>
      %200 = vector.broadcast %198 : vector<2x1x16xi1> to vector<2x16x16xi1>
      %201 = arith.ori %199, %200 : vector<2x16x16xi1>
      %cst_76 = arith.constant -1.000000e+30 : f32
      %cst_77 = arith.constant 0.000000e+00 : f32
      %202 = vector.broadcast %cst_76 : f32 to vector<2x16x16xf32>
      %203 = vector.broadcast %cst_77 : f32 to vector<2x16x16xf32>
      %204 = arith.select %201, %202, %203 : vector<2x16x16xi1>, vector<2x16x16xf32>
      %c0_78 = arith.constant 0 : index
      %c0_79 = arith.constant 0 : index
      %c0_80 = arith.constant 0 : index
      %205 = vector.load %arg12[%c0_78, %c0_79, %c0_80] : memref<2x16x16xf32, #tpu.memory_space<vmem>>, vector<2x16x16xf32>
      tpu.vector_store %arg12[%c0_78, %c0_79, %c0_80], %204 {strides = array<i32>} : memref<2x16x16xf32, #tpu.memory_space<vmem>>, vector<2x16x16xf32>,
    } else {
    }
    %c0_3 = arith.constant 0 : index
    %c0_4 = arith.constant 0 : index
    %c0_5 = arith.constant 0 : index
    %4 = vector.load %arg11[%c0_3, %c0_4, %c0_5] : memref<2x16x128xf32, #tpu.memory_space<vmem>>, vector<2x16x128xf32>
    %5 = vector.shape_cast %4 : vector<2x16x128xf32> to vector<32x128xf32>
    %6 = arith.truncf %5 : vector<32x128xf32> to vector<32x128xbf16>
    %c0_6 = arith.constant 0 : index
    %c0_7 = arith.constant 0 : index
    %c0_8 = arith.constant 0 : index
    %7 = vector.load %arg12[%c0_6, %c0_7, %c0_8] : memref<2x16x16xf32, #tpu.memory_space<vmem>>, vector<2x16x16xf32>
    %cst = arith.constant dense<0x7F800000> : vector<2x1xf32>
    %8 = vector.multi_reduction <minimumf>, %0, %cst [2] : vector<2x1x16xf32> to vector<2x1xf32>
    %9 = vector.shape_cast %8 : vector<2x1xf32> to vector<2x1x1xf32>
    %cst_9 = arith.constant 1.000000e+00 : f32
    %10 = vector.broadcast %cst_9 : f32 to vector<2x1x1xf32>
    %11 = arith.subf %10, %9 : vector<2x1x1xf32>
    %c0_10 = arith.constant 0 : index
    %c0_11 = arith.constant 0 : index
    %c0_12 = arith.constant 0 : index
    %12 = vector.load %arg4[%c0_10, %c0_11, %c0_12] : memref<1x128x384xbf16, #tpu.memory_space<vmem>>, vector<1x128x384xbf16>
    %13 = vector.shape_cast %12 : vector<1x128x384xbf16> to vector<128x384xbf16>
    %cst_13 = arith.constant dense<0.000000e+00> : vector<32x384xf32>
    %14 = tpu.matmul %6, %13, %cst_13 {dimension_numbers = #tpu.dot_dimension_numbers<[1], [0], [0], [1], [0, 0, 1, 1], [], []>} : vector<32x128xbf16>, vector<128x384xbf16>, vector<32x384xf32> -> vector<32x384xf32>
    %c0_14 = arith.constant 0 : index
    %c0_15 = arith.constant 0 : index
    %c0_16 = arith.constant 0 : index
    %15 = vector.load %arg8[%c0_14, %c0_15, %c0_16] : memref<1x1x384xf32, #tpu.memory_space<vmem>>, vector<1x1x384xf32>
    %16 = vector.shape_cast %15 : vector<1x1x384xf32> to vector<1x384xf32>
    %17 = vector.broadcast %16 : vector<1x384xf32> to vector<32x384xf32>
    %18 = arith.addf %14, %17 : vector<32x384xf32>
    %19 = vector.extract_strided_slice %18 {offsets = [0, 0], sizes = [32, 128], strides = [1, 1]} : vector<32x384xf32> to vector<32x128xf32>
    %cst_17 = arith.constant 0.176776692 : f32
    %20 = vector.broadcast %cst_17 : f32 to vector<32x128xf32>
    %21 = arith.mulf %19, %20 : vector<32x128xf32>
    %22 = vector.shape_cast %21 : vector<32x128xf32> to vector<2x16x128xf32>
    %23 = arith.truncf %22 : vector<2x16x128xf32> to vector<2x16x128xbf16>
    %24 = vector.extract_strided_slice %18 {offsets = [0, 128], sizes = [32, 128], strides = [1, 1]} : vector<32x384xf32> to vector<32x128xf32>
    %25 = vector.shape_cast %24 : vector<32x128xf32> to vector<2x16x128xf32>
    %26 = arith.truncf %25 : vector<2x16x128xf32> to vector<2x16x128xbf16>
    %27 = vector.extract_strided_slice %18 {offsets = [0, 256], sizes = [32, 128], strides = [1, 1]} : vector<32x384xf32> to vector<32x128xf32>
    %28 = vector.shape_cast %27 : vector<32x128xf32> to vector<2x16x128xf32>
    %29 = arith.truncf %28 : vector<2x16x128xf32> to vector<2x16x128xbf16>
    %30 = vector.extract_strided_slice %23 {offsets = [0, 0, 0], sizes = [2, 16, 32], strides = [1, 1, 1]} : vector<2x16x128xbf16> to vector<2x16x32xbf16>
    %31 = vector.extract_strided_slice %26 {offsets = [0, 0, 0], sizes = [2, 16, 32], strides = [1, 1, 1]} : vector<2x16x128xbf16> to vector<2x16x32xbf16>
    %32 = vector.extract_strided_slice %29 {offsets = [0, 0, 0], sizes = [2, 16, 32], strides = [1, 1, 1]} : vector<2x16x128xbf16> to vector<2x16x32xbf16>
    %cst_18 = arith.constant dense<0.000000e+00> : vector<2x16x16xf32>
    %33 = tpu.matmul %30, %31, %cst_18 {dimension_numbers = #tpu.dot_dimension_numbers<[2], [2], [1], [1], [0, 0, 0, 1, 1, 1], [0], [0]>} : vector<2x16x32xbf16>, vector<2x16x32xbf16>, vector<2x16x16xf32> -> vector<2x16x16xf32>
    %34 = arith.addf %33, %7 : vector<2x16x16xf32>
    %cst_19 = arith.constant dense<0xFF800000> : vector<2x16xf32>
    %35 = vector.multi_reduction <maximumf>, %34, %cst_19 [2] : vector<2x16x16xf32> to vector<2x16xf32>
    %36 = vector.shape_cast %35 : vector<2x16xf32> to vector<2x16x1xf32>
    %37 = vector.broadcast %36 : vector<2x16x1xf32> to vector<2x16x16xf32>
    %38 = arith.subf %34, %37 : vector<2x16x16xf32>
    %39 = math.exp %38 : vector<2x16x16xf32>
    %cst_20 = arith.constant dense<0.000000e+00> : vector<2x16xf32>
    %40 = vector.multi_reduction <add>, %39, %cst_20 [2] : vector<2x16x16xf32> to vector<2x16xf32>
    %41 = vector.shape_cast %40 : vector<2x16xf32> to vector<2x16x1xf32>
    %42 = tpu.reciprocal %41 {approx = true} : vector<2x16x1xf32> -> vector<2x16x1xf32>
    %43 = vector.broadcast %42 : vector<2x16x1xf32> to vector<2x16x16xf32>
    %44 = arith.mulf %39, %43 : vector<2x16x16xf32>
    %45 = arith.truncf %44 : vector<2x16x16xf32> to vector<2x16x16xbf16>
    %cst_21 = arith.constant dense<0.000000e+00> : vector<2x16x32xf32>
    %46 = tpu.matmul %45, %32, %cst_21 {dimension_numbers = #tpu.dot_dimension_numbers<[2], [1], [1], [2], [0, 0, 0, 1, 1, 2], [0], [0]>} : vector<2x16x16xbf16>, vector<2x16x32xbf16>, vector<2x16x32xf32> -> vector<2x16x32xf32>
    %47 = vector.extract_strided_slice %23 {offsets = [0, 0, 32], sizes = [2, 16, 32], strides = [1, 1, 1]} : vector<2x16x128xbf16> to vector<2x16x32xbf16>
    %48 = vector.extract_strided_slice %26 {offsets = [0, 0, 32], sizes = [2, 16, 32], strides = [1, 1, 1]} : vector<2x16x128xbf16> to vector<2x16x32xbf16>
    %49 = vector.extract_strided_slice %29 {offsets = [0, 0, 32], sizes = [2, 16, 32], strides = [1, 1, 1]} : vector<2x16x128xbf16> to vector<2x16x32xbf16>
    %cst_22 = arith.constant dense<0.000000e+00> : vector<2x16x16xf32>
    %50 = tpu.matmul %47, %48, %cst_22 {dimension_numbers = #tpu.dot_dimension_numbers<[2], [2], [1], [1], [0, 0, 0, 1, 1, 1], [0], [0]>} : vector<2x16x32xbf16>, vector<2x16x32xbf16>, vector<2x16x16xf32> -> vector<2x16x16xf32>
    %51 = arith.addf %50, %7 : vector<2x16x16xf32>
    %cst_23 = arith.constant dense<0xFF800000> : vector<2x16xf32>
    %52 = vector.multi_reduction <maximumf>, %51, %cst_23 [2] : vector<2x16x16xf32> to vector<2x16xf32>
    %53 = vector.shape_cast %52 : vector<2x16xf32> to vector<2x16x1xf32>
    %54 = vector.broadcast %53 : vector<2x16x1xf32> to vector<2x16x16xf32>
    %55 = arith.subf %51, %54 : vector<2x16x16xf32>
    %56 = math.exp %55 : vector<2x16x16xf32>
    %cst_24 = arith.constant dense<0.000000e+00> : vector<2x16xf32>
    %57 = vector.multi_reduction <add>, %56, %cst_24 [2] : vector<2x16x16xf32> to vector<2x16xf32>
    %58 = vector.shape_cast %57 : vector<2x16xf32> to vector<2x16x1xf32>
    %59 = tpu.reciprocal %58 {approx = true} : vector<2x16x1xf32> -> vector<2x16x1xf32>
    %60 = vector.broadcast %59 : vector<2x16x1xf32> to vector<2x16x16xf32>
    %61 = arith.mulf %56, %60 : vector<2x16x16xf32>
    %62 = arith.truncf %61 : vector<2x16x16xf32> to vector<2x16x16xbf16>
    %cst_25 = arith.constant dense<0.000000e+00> : vector<2x16x32xf32>
    %63 = tpu.matmul %62, %49, %cst_25 {dimension_numbers = #tpu.dot_dimension_numbers<[2], [1], [1], [2], [0, 0, 0, 1, 1, 2], [0], [0]>} : vector<2x16x16xbf16>, vector<2x16x32xbf16>, vector<2x16x32xf32> -> vector<2x16x32xf32>
    %64 = vector.extract_strided_slice %23 {offsets = [0, 0, 64], sizes = [2, 16, 32], strides = [1, 1, 1]} : vector<2x16x128xbf16> to vector<2x16x32xbf16>
    %65 = vector.extract_strided_slice %26 {offsets = [0, 0, 64], sizes = [2, 16, 32], strides = [1, 1, 1]} : vector<2x16x128xbf16> to vector<2x16x32xbf16>
    %66 = vector.extract_strided_slice %29 {offsets = [0, 0, 64], sizes = [2, 16, 32], strides = [1, 1, 1]} : vector<2x16x128xbf16> to vector<2x16x32xbf16>
    %cst_26 = arith.constant dense<0.000000e+00> : vector<2x16x16xf32>
    %67 = tpu.matmul %64, %65, %cst_26 {dimension_numbers = #tpu.dot_dimension_numbers<[2], [2], [1], [1], [0, 0, 0, 1, 1, 1], [0], [0]>} : vector<2x16x32xbf16>, vector<2x16x32xbf16>, vector<2x16x16xf32> -> vector<2x16x16xf32>
    %68 = arith.addf %67, %7 : vector<2x16x16xf32>
    %cst_27 = arith.constant dense<0xFF800000> : vector<2x16xf32>
    %69 = vector.multi_reduction <maximumf>, %68, %cst_27 [2] : vector<2x16x16xf32> to vector<2x16xf32>
    %70 = vector.shape_cast %69 : vector<2x16xf32> to vector<2x16x1xf32>
    %71 = vector.broadcast %70 : vector<2x16x1xf32> to vector<2x16x16xf32>
    %72 = arith.subf %68, %71 : vector<2x16x16xf32>
    %73 = math.exp %72 : vector<2x16x16xf32>
    %cst_28 = arith.constant dense<0.000000e+00> : vector<2x16xf32>
    %74 = vector.multi_reduction <add>, %73, %cst_28 [2] : vector<2x16x16xf32> to vector<2x16xf32>
    %75 = vector.shape_cast %74 : vector<2x16xf32> to vector<2x16x1xf32>
    %76 = tpu.reciprocal %75 {approx = true} : vector<2x16x1xf32> -> vector<2x16x1xf32>
    %77 = vector.broadcast %76 : vector<2x16x1xf32> to vector<2x16x16xf32>
    %78 = arith.mulf %73, %77 : vector<2x16x16xf32>
    %79 = arith.truncf %78 : vector<2x16x16xf32> to vector<2x16x16xbf16>
    %cst_29 = arith.constant dense<0.000000e+00> : vector<2x16x32xf32>
    %80 = tpu.matmul %79, %66, %cst_29 {dimension_numbers = #tpu.dot_dimension_numbers<[2], [1], [1], [2], [0, 0, 0, 1, 1, 2], [0], [0]>} : vector<2x16x16xbf16>, vector<2x16x32xbf16>, vector<2x16x32xf32> -> vector<2x16x32xf32>
    %81 = vector.extract_strided_slice %23 {offsets = [0, 0, 96], sizes = [2, 16, 32], strides = [1, 1, 1]} : vector<2x16x128xbf16> to vector<2x16x32xbf16>
    %82 = vector.extract_strided_slice %26 {offsets = [0, 0, 96], sizes = [2, 16, 32], strides = [1, 1, 1]} : vector<2x16x128xbf16> to vector<2x16x32xbf16>
    %83 = vector.extract_strided_slice %29 {offsets = [0, 0, 96], sizes = [2, 16, 32], strides = [1, 1, 1]} : vector<2x16x128xbf16> to vector<2x16x32xbf16>
    %cst_30 = arith.constant dense<0.000000e+00> : vector<2x16x16xf32>
    %84 = tpu.matmul %81, %82, %cst_30 {dimension_numbers = #tpu.dot_dimension_numbers<[2], [2], [1], [1], [0, 0, 0, 1, 1, 1], [0], [0]>} : vector<2x16x32xbf16>, vector<2x16x32xbf16>, vector<2x16x16xf32> -> vector<2x16x16xf32>
    %85 = arith.addf %84, %7 : vector<2x16x16xf32>
    %cst_31 = arith.constant dense<0xFF800000> : vector<2x16xf32>
    %86 = vector.multi_reduction <maximumf>, %85, %cst_31 [2] : vector<2x16x16xf32> to vector<2x16xf32>
    %87 = vector.shape_cast %86 : vector<2x16xf32> to vector<2x16x1xf32>
    %88 = vector.broadcast %87 : vector<2x16x1xf32> to vector<2x16x16xf32>
    %89 = arith.subf %85, %88 : vector<2x16x16xf32>
    %90 = math.exp %89 : vector<2x16x16xf32>
    %cst_32 = arith.constant dense<0.000000e+00> : vector<2x16xf32>
    %91 = vector.multi_reduction <add>, %90, %cst_32 [2] : vector<2x16x16xf32> to vector<2x16xf32>
    %92 = vector.shape_cast %91 : vector<2x16xf32> to vector<2x16x1xf32>
    %93 = tpu.reciprocal %92 {approx = true} : vector<2x16x1xf32> -> vector<2x16x1xf32>
    %94 = vector.broadcast %93 : vector<2x16x1xf32> to vector<2x16x16xf32>
    %95 = arith.mulf %90, %94 : vector<2x16x16xf32>
    %96 = arith.truncf %95 : vector<2x16x16xf32> to vector<2x16x16xbf16>
    %cst_33 = arith.constant dense<0.000000e+00> : vector<2x16x32xf32>
    %97 = tpu.matmul %96, %83, %cst_33 {dimension_numbers = #tpu.dot_dimension_numbers<[2], [1], [1], [2], [0, 0, 0, 1, 1, 2], [0], [0]>} : vector<2x16x16xbf16>, vector<2x16x32xbf16>, vector<2x16x32xf32> -> vector<2x16x32xf32>
    %98 = tpu.concatenate %46, %63, %80, %97 in 2 : vector<2x16x32xf32>, vector<2x16x32xf32>, vector<2x16x32xf32>, vector<2x16x32xf32> -> vector<2x16x128xf32>
    %99 = vector.broadcast %11 : vector<2x1x1xf32> to vector<2x16x128xf32>
    %100 = arith.mulf %98, %99 : vector<2x16x128xf32>
    %101 = vector.shape_cast %100 : vector<2x16x128xf32> to vector<32x128xf32>
    %102 = arith.truncf %101 : vector<32x128xf32> to vector<32x128xbf16>
    %c0_34 = arith.constant 0 : index
    %c0_35 = arith.constant 0 : index
    %c0_36 = arith.constant 0 : index
    %103 = vector.load %arg10[%c0_34, %c0_35, %c0_36] : memref<1x6x128xf32, #tpu.memory_space<vmem>>, vector<1x6x128xf32>
    %104 = vector.shape_cast %103 : vector<1x6x128xf32> to vector<6x128xf32>
    %105 = vector.extract_strided_slice %104 {offsets = [0, 0], sizes = [1, 128], strides = [1, 1]} : vector<6x128xf32> to vector<1x128xf32>
    %106 = vector.extract_strided_slice %104 {offsets = [1, 0], sizes = [1, 128], strides = [1, 1]} : vector<6x128xf32> to vector<1x128xf32>
    %107 = vector.extract_strided_slice %104 {offsets = [2, 0], sizes = [1, 128], strides = [1, 1]} : vector<6x128xf32> to vector<1x128xf32>
    %108 = vector.extract_strided_slice %104 {offsets = [3, 0], sizes = [1, 128], strides = [1, 1]} : vector<6x128xf32> to vector<1x128xf32>
    %109 = vector.extract_strided_slice %104 {offsets = [4, 0], sizes = [1, 128], strides = [1, 1]} : vector<6x128xf32> to vector<1x128xf32>
    %110 = vector.extract_strided_slice %104 {offsets = [5, 0], sizes = [1, 128], strides = [1, 1]} : vector<6x128xf32> to vector<1x128xf32>
    %c0_37 = arith.constant 0 : index
    %c0_38 = arith.constant 0 : index
    %c0_39 = arith.constant 0 : index
    %111 = vector.load %arg5[%c0_37, %c0_38, %c0_39] : memref<1x128x128xbf16, #tpu.memory_space<vmem>>, vector<1x128x128xbf16>
    %112 = vector.shape_cast %111 : vector<1x128x128xbf16> to vector<128x128xbf16>
    %cst_40 = arith.constant dense<0.000000e+00> : vector<32x128xf32>
    %113 = tpu.matmul %102, %112, %cst_40 {dimension_numbers = #tpu.dot_dimension_numbers<[1], [0], [0], [1], [0, 0, 1, 1], [], []>} : vector<32x128xbf16>, vector<128x128xbf16>, vector<32x128xf32> -> vector<32x128xf32>
    %114 = vector.broadcast %105 : vector<1x128xf32> to vector<32x128xf32>
    %115 = arith.addf %113, %114 : vector<32x128xf32>
    %116 = arith.addf %5, %115 : vector<32x128xf32>
    %cst_41 = arith.constant dense<0.000000e+00> : vector<32xf32>
    %117 = vector.multi_reduction <add>, %116, %cst_41 [1] : vector<32x128xf32> to vector<32xf32>
    %118 = vector.shape_cast %117 : vector<32xf32> to vector<32x1xf32>
    %cst_42 = arith.constant 1.280000e+02 : f32
    %119 = vector.broadcast %cst_42 : f32 to vector<32x1xf32>
    %120 = arith.divf %118, %119 : vector<32x1xf32>
    %121 = vector.broadcast %120 : vector<32x1xf32> to vector<32x128xf32>
    %122 = arith.subf %116, %121 : vector<32x128xf32>
    %123 = arith.mulf %122, %122 : vector<32x128xf32>
    %cst_43 = arith.constant dense<0.000000e+00> : vector<32xf32>
    %124 = vector.multi_reduction <add>, %123, %cst_43 [1] : vector<32x128xf32> to vector<32xf32>
    %125 = vector.shape_cast %124 : vector<32xf32> to vector<32x1xf32>
    %cst_44 = arith.constant 1.280000e+02 : f32
    %126 = vector.broadcast %cst_44 : f32 to vector<32x1xf32>
    %127 = arith.divf %125, %126 : vector<32x1xf32>
    %128 = vector.broadcast %120 : vector<32x1xf32> to vector<32x128xf32>
    %129 = arith.subf %116, %128 : vector<32x128xf32>
    %cst_45 = arith.constant 9.99999974E-6 : f32
    %130 = vector.broadcast %cst_45 : f32 to vector<32x1xf32>
    %131 = arith.addf %127, %130 : vector<32x1xf32>
    %132 = math.rsqrt %131 : vector<32x1xf32>
    %133 = vector.broadcast %132 : vector<32x1xf32> to vector<32x128xf32>
    %134 = arith.mulf %129, %133 : vector<32x128xf32>
    %135 = vector.broadcast %107 : vector<1x128xf32> to vector<32x128xf32>
    %136 = arith.mulf %134, %135 : vector<32x128xf32>
    %137 = vector.broadcast %108 : vector<1x128xf32> to vector<32x128xf32>
    %138 = arith.addf %136, %137 : vector<32x128xf32>
    %139 = arith.truncf %138 : vector<32x128xf32> to vector<32x128xbf16>
    %c0_46 = arith.constant 0 : index
    %c0_47 = arith.constant 0 : index
    %c0_48 = arith.constant 0 : index
    %140 = vector.load %arg6[%c0_46, %c0_47, %c0_48] : memref<1x128x512xbf16, #tpu.memory_space<vmem>>, vector<1x128x512xbf16>
    %141 = vector.shape_cast %140 : vector<1x128x512xbf16> to vector<128x512xbf16>
    %cst_49 = arith.constant dense<0.000000e+00> : vector<32x512xf32>
    %142 = tpu.matmul %139, %141, %cst_49 {dimension_numbers = #tpu.dot_dimension_numbers<[1], [0], [0], [1], [0, 0, 1, 1], [], []>} : vector<32x128xbf16>, vector<128x512xbf16>, vector<32x512xf32> -> vector<32x512xf32>
    %c0_50 = arith.constant 0 : index
    %c0_51 = arith.constant 0 : index
    %c0_52 = arith.constant 0 : index
    %143 = vector.load %arg9[%c0_50, %c0_51, %c0_52] : memref<1x1x512xf32, #tpu.memory_space<vmem>>, vector<1x1x512xf32>
    %144 = vector.shape_cast %143 : vector<1x1x512xf32> to vector<1x512xf32>
    %145 = vector.broadcast %144 : vector<1x512xf32> to vector<32x512xf32>
    %146 = arith.addf %142, %145 : vector<32x512xf32>
    %cst_53 = arith.constant 5.000000e-01 : f32
    %147 = vector.broadcast %cst_53 : f32 to vector<32x512xf32>
    %148 = arith.mulf %147, %146 : vector<32x512xf32>
    %cst_54 = arith.constant 4.471500e-02 : f32
    %149 = vector.broadcast %cst_54 : f32 to vector<32x512xf32>
    %150 = arith.mulf %149, %146 : vector<32x512xf32>
    %151 = arith.mulf %150, %146 : vector<32x512xf32>
    %152 = arith.mulf %151, %146 : vector<32x512xf32>
    %153 = arith.addf %146, %152 : vector<32x512xf32>
    %cst_55 = arith.constant 0.797884583 : f32
    %154 = vector.broadcast %cst_55 : f32 to vector<32x512xf32>
    %155 = arith.mulf %154, %153 : vector<32x512xf32>
    %156 = math.tanh %155 : vector<32x512xf32>
    %cst_56 = arith.constant 1.000000e+00 : f32
    %157 = vector.broadcast %cst_56 : f32 to vector<32x512xf32>
    %158 = arith.addf %157, %156 : vector<32x512xf32>
    %159 = arith.mulf %148, %158 : vector<32x512xf32>
    %160 = arith.truncf %159 : vector<32x512xf32> to vector<32x512xbf16>
    %c0_57 = arith.constant 0 : index
    %c0_58 = arith.constant 0 : index
    %c0_59 = arith.constant 0 : index
    %161 = vector.load %arg7[%c0_57, %c0_58, %c0_59] : memref<1x512x128xbf16, #tpu.memory_space<vmem>>, vector<1x512x128xbf16>
    %162 = vector.shape_cast %161 : vector<1x512x128xbf16> to vector<512x128xbf16>
    %cst_60 = arith.constant dense<0.000000e+00> : vector<32x128xf32>
    %163 = tpu.matmul %160, %162, %cst_60 {dimension_numbers = #tpu.dot_dimension_numbers<[1], [0], [0], [1], [0, 0, 1, 1], [], []>} : vector<32x512xbf16>, vector<512x128xbf16>, vector<32x128xf32> -> vector<32x128xf32>
    %164 = vector.broadcast %106 : vector<1x128xf32> to vector<32x128xf32>
    %165 = arith.addf %163, %164 : vector<32x128xf32>
    %166 = arith.addf %138, %165 : vector<32x128xf32>
    %cst_61 = arith.constant dense<0.000000e+00> : vector<32xf32>
    %167 = vector.multi_reduction <add>, %166, %cst_61 [1] : vector<32x128xf32> to vector<32xf32>
    %168 = vector.shape_cast %167 : vector<32xf32> to vector<32x1xf32>
    %cst_62 = arith.constant 1.280000e+02 : f32
    %169 = vector.broadcast %cst_62 : f32 to vector<32x1xf32>
    %170 = arith.divf %168, %169 : vector<32x1xf32>
    %171 = vector.broadcast %170 : vector<32x1xf32> to vector<32x128xf32>
    %172 = arith.subf %166, %171 : vector<32x128xf32>
    %173 = arith.mulf %172, %172 : vector<32x128xf32>
    %cst_63 = arith.constant dense<0.000000e+00> : vector<32xf32>
    %174 = vector.multi_reduction <add>, %173, %cst_63 [1] : vector<32x128xf32> to vector<32xf32>
    %175 = vector.shape_cast %174 : vector<32xf32> to vector<32x1xf32>
    %cst_64 = arith.constant 1.280000e+02 : f32
    %176 = vector.broadcast %cst_64 : f32 to vector<32x1xf32>
    %177 = arith.divf %175, %176 : vector<32x1xf32>
    %178 = vector.broadcast %170 : vector<32x1xf32> to vector<32x128xf32>
    %179 = arith.subf %166, %178 : vector<32x128xf32>
    %cst_65 = arith.constant 9.99999974E-6 : f32
    %180 = vector.broadcast %cst_65 : f32 to vector<32x1xf32>
    %181 = arith.addf %177, %180 : vector<32x1xf32>
    %182 = math.rsqrt %181 : vector<32x1xf32>
    %183 = vector.broadcast %182 : vector<32x1xf32> to vector<32x128xf32>
    %184 = arith.mulf %179, %183 : vector<32x128xf32>
    %185 = vector.broadcast %109 : vector<1x128xf32> to vector<32x128xf32>
    %186 = arith.mulf %184, %185 : vector<32x128xf32>
    %187 = vector.broadcast %110 : vector<1x128xf32> to vector<32x128xf32>
    %188 = arith.addf %186, %187 : vector<32x128xf32>
    %189 = vector.shape_cast %188 : vector<32x128xf32> to vector<2x16x128xf32>
    %c0_66 = arith.constant 0 : index
    %c0_67 = arith.constant 0 : index
    %c0_68 = arith.constant 0 : index
    %190 = vector.load %arg11[%c0_66, %c0_67, %c0_68] : memref<2x16x128xf32, #tpu.memory_space<vmem>>, vector<2x16x128xf32>
    tpu.vector_store %arg11[%c0_66, %c0_67, %c0_68], %189 {strides = array<i32>} : memref<2x16x128xf32, #tpu.memory_space<vmem>>, vector<2x16x128xf32>,
    return
  }
  func.func @transform_0(%arg0: i32, %arg1: i32) -> (i32, i32, i32) {
    %c0_i32 = arith.constant 0 : i32
    %c0_i32_0 = arith.constant 0 : i32
    %c0_i32_1 = arith.constant 0 : i32
    return %arg0, %c0_i32, %c0_i32_0 : i32, i32, i32
  }
  func.func @transform_1(%arg0: i32, %arg1: i32) -> (i32, i32, i32) {
    %c0_i32 = arith.constant 0 : i32
    %c0_i32_0 = arith.constant 0 : i32
    %c0_i32_1 = arith.constant 0 : i32
    return %arg0, %c0_i32, %c0_i32_0 : i32, i32, i32
  }
  func.func @transform_2(%arg0: i32, %arg1: i32) -> (i32, i32, i32) {
    %c0_i32 = arith.constant 0 : i32
    %c0_i32_0 = arith.constant 0 : i32
    %c0_i32_1 = arith.constant 0 : i32
    return %arg1, %c0_i32, %c0_i32_0 : i32, i32, i32
  }
  func.func @transform_3(%arg0: i32, %arg1: i32) -> (i32, i32, i32) {
    %c0_i32 = arith.constant 0 : i32
    %c0_i32_0 = arith.constant 0 : i32
    %c0_i32_1 = arith.constant 0 : i32
    return %arg1, %c0_i32, %c0_i32_0 : i32, i32, i32
  }
  func.func @transform_4(%arg0: i32, %arg1: i32) -> (i32, i32, i32) {
    %c0_i32 = arith.constant 0 : i32
    %c0_i32_0 = arith.constant 0 : i32
    %c0_i32_1 = arith.constant 0 : i32
    return %arg1, %c0_i32, %c0_i32_0 : i32, i32, i32
  }
  func.func @transform_5(%arg0: i32, %arg1: i32) -> (i32, i32, i32) {
    %c0_i32 = arith.constant 0 : i32
    %c0_i32_0 = arith.constant 0 : i32
    %c0_i32_1 = arith.constant 0 : i32
    return %arg1, %c0_i32, %c0_i32_0 : i32, i32, i32
  }
  func.func @transform_6(%arg0: i32, %arg1: i32) -> (i32, i32, i32) {
    %c0_i32 = arith.constant 0 : i32
    %c0_i32_0 = arith.constant 0 : i32
    %c0_i32_1 = arith.constant 0 : i32
    return %arg1, %c0_i32, %c0_i32_0 : i32, i32, i32
  }
  func.func @transform_7(%arg0: i32, %arg1: i32) -> (i32, i32, i32) {
    %c0_i32 = arith.constant 0 : i32
    %c0_i32_0 = arith.constant 0 : i32
    %c0_i32_1 = arith.constant 0 : i32
    return %arg1, %c0_i32, %c0_i32_0 : i32, i32, i32
  }
  func.func @transform_8(%arg0: i32, %arg1: i32) -> (i32, i32, i32) {
    %c0_i32 = arith.constant 0 : i32
    %c0_i32_0 = arith.constant 0 : i32
    %c0_i32_1 = arith.constant 0 : i32
    return %arg1, %c0_i32, %c0_i32_0 : i32, i32, i32
  }
  func.func @transform_9(%arg0: i32, %arg1: i32) -> (i32, i32, i32) {
    %c0_i32 = arith.constant 0 : i32
    %c0_i32_0 = arith.constant 0 : i32
    %c0_i32_1 = arith.constant 0 : i32
    return %arg0, %c0_i32, %c0_i32_0 : i32, i32, i32
  }
}

</mosaic_0001>

<bundles_post_ra>
// kernel: transformer_module_forward.1
= control target key start
LH: loop header
LB: loop body
LE: loop exit
PB: predicated region body
PF: predicated region fallthrough
CT: control target
= control target key end

     0   :  { %s3879_s30 = smov 0   ;;  %s3881_s10 = smov 0   ;;  %s4559_s0 = inlined_call_operand.vmem [shape: f32[2,16,128], index: 0, kind: input, shape index: {}, may-alias: {0,9}]   ;;  %s4560_s1 = inlined_call_operand.vmem [shape: f32[2,1,16], index: 1, kind: input, shape index: {}]   ;;  %s4561_s2 = inlined_call_operand.vmem [shape: bf16[2,128,384], index: 2, kind: input, shape index: {}]   ;;  %s4562_s3 = inlined_call_operand.vmem [shape: bf16[2,128,128], index: 3, kind: input, shape index: {}]   ;;  %s4563_s4 = inlined_call_operand.vmem [shape: bf16[2,128,512], index: 4, kind: input, shape index: {}]   ;;  %s4564_s5 = inlined_call_operand.vmem [shape: bf16[2,512,128], index: 5, kind: input, shape index: {}]   ;;  %s4565_s6 = inlined_call_operand.vmem [shape: f32[2,1,384], index: 6, kind: input, shape index: {}]   ;;  %s4566_s7 = inlined_call_operand.vmem [shape: f32[2,1,512], index: 7, kind: input, shape index: {}]   ;;  %s4567_s8 = inlined_call_operand.vmem [shape: f32[2,6,128], index: 8, kind: input, shape index: {}]   ;;  %s4568_s9 = inlined_call_operand.vmem [shape: f32[2,16,128], index: 9, kind: output, shape index: {}, may-alias: {0,9}]  }
   0x1   :  { %4569 = sst [smem:[#allocation3_spill]] %s4560_s1  ;;  %s3883_s11 = smov 0  }
   0x2   :  { %4570 = sst [smem:[#allocation4_spill]] %s4561_s2 }
   0x3   :  { %4571 = sst [smem:[#allocation5_spill]] %s4562_s3 }
   0x4 LB: > { %s28_s12 = sadd.s32 1, %s3815_s10  ;;  %p3153_p0 = scmp.ge.s32.totalorder %s3819_s11, 1  ;;  %s3819_s11 = sphi %s3883_s11, %s19_s11   ;;  %s3815_s10 = sphi %s3881_s10, %s4576_s10   ;;  %s3811_s30 = sphi %s3879_s30, %s4575_s30  }
   0x5   : > { %p29_p1 = scmp.ge.s32.totalorder %s28_s12, 2  ;;  %p378_p2 = scmp.lt.s32.totalorder %s3819_s11, 3 }
   0x7   : > { %s4578_s12 = smov (%p29_p1, %s28_s12), 0  ;;  %p379_p3 = pnand %p3153_p0, %p378_p2 }
   0x8   : > { %p464_p4 = scmp.lt.s32.totalorder (!%p379_p3), %s3811_s30, 1  ;;  %s4572_s1 = sld [smem:[#allocation3_spill]] (!%p379_p3) }
   0x9   : > { %382 = sbr.rel (%p379_p3) target bundleno = 4215 (0x1077), region = 56  ;;  %s4573_s3 = sld [smem:[#allocation5_spill]] (!%p379_p3) }
   0xa   : > { %s4574_s2 = sld [smem:[#allocation4_spill]] (!%p379_p3)  ;;  %p3163_p5 = scmp.ne.s32.totalorder (!%p379_p3), %s3811_s30, 0 }
   0xe   : > { %v3900_v0 = vld [vmem:[%s4572_s1] sm:$0x1] (!%p379_p3)  ;;  %v3905_v1 = vld [vmem:[%s4572_s1 + $0x1] sm:$0x1] (!%p379_p3) }
  0x10   : > { %s465_s17 = scalar_select %p464_p4, %s3811_s30, 1 }
  0x11   : > { %v510_v2 = vld [vmem:[%s4559_s0] sm:$0xff] (!%p3163_p5)  ;;  %v511_v3 = vld [vmem:[%s4559_s0 + $0x8] sm:$0xff] (!%p3163_p5)  ;;  %v512_v4 = vld [vmem:[%s4559_s0 + $0x10] sm:$0xff] (!%p3163_p5)  ;;  %v518_v5 = vlaneseq (!%p3163_p5)  ;;  %vm525_vm0 = vcmp.gt.f32.partialorder (!%p3163_p5), %v3900_v0, 0.0  ;;  %vm526_vm1 = vcmp.gt.f32.partialorder (!%p3163_p5), %v3905_v1, 0.0  ;;  %v3821_v9 = vmov (!%p3163_p5), 0  }
  0x12   : > { %s3527_s18 = smul.u32 192, %s465_s17  ;;  %s3280_s19 = sshll.u32 %s465_s17, 6  ;;  %514 = vst [vmem:[%s4568_s9] sm:$0xff] (!%p3163_p5), %v510_v2  ;;  %515 = vst [vmem:[%s4568_s9 + $0x8] sm:$0xff] (!%p3163_p5), %v511_v3  ;;  %v531_v10 = vsel (!%p3163_p5), %vm525_vm0, 1, %v3821_v9  ;;  %v532_v11 = vsel (!%p3163_p5), %vm526_vm1, 1, %v3821_v9  ;;  %vm551_vm5 = vcmask (!%p3163_p5), 130048  }
  0x13   : > { %s3910_s22 = scalar_lea.vmem %s4573_s3, %s3280_s19  ;;  %s3281_s23 = sshll.u32 %s465_s17, 8  ;;  %516 = vst [vmem:[%s4568_s9 + $0x10] sm:$0xff] (!%p3163_p5), %v512_v4  ;;  %v519_v7 = vshrl.u32 (!%p3163_p5), %v518_v5, 7  ;;  %v522_v8 = vand.u32 (!%p3163_p5), 127, %v518_v5  ;;  %v3822_v16 = vmov (!%p3163_p5), 0.0  }
  0x14   : > { %s3915_s26 = scalar_lea.vmem %s4574_s2, %s3527_s18  ;;  %s3920_s29 = scalar_lea.vmem %s4563_s4, %s3281_s23 }
  0x15   : > { %s3925_s15 = scalar_lea.vmem %s4564_s5, %s3281_s23  ;;  %s3528_s16 = smul.u32 3, %s465_s17  ;;  %v535_v12 = vsub.s32 (!%p3163_p5), 0, %v519_v7  ;;  %v520_v13 = vadd.s32 (!%p3163_p5), 8, %v519_v7  ;;  %vm523_vm2 = vcmp.gt.s32.totalorder (!%p3163_p5), %v522_v8, %v519_v7 }
  0x16   : > { %s3161_s20 = sshll.u32 %s465_s17, 2  ;;  %s3162_s19 = sshll.u32 %s465_s17, 3 }
  0x17   : > { %s3930_s3 = scalar_lea.vmem %s4565_s6, %s3528_s16  ;;  %s3935_s25 = scalar_lea.vmem %s4566_s7, %s3161_s20  ;;  %v536_v14 = vrot.slane (!%p3163_p5), %v531_v10, %v535_v12  ;;  %v540_v15 = vrot.slane (!%p3163_p5), %v532_v11, %v535_v12  ;;  %vm524_vm3 = vcmp.gt.s32.totalorder (!%p3163_p5), %v522_v8, %v520_v13 }
  0x18   : > { %s3940_s2 = scalar_lea.vmem %s4567_s8, %s3162_s19  ;;  %509 = sbr.rel (%p3163_p5) target bundleno = 32 (0x20), region = 60 }
  0x19   : > { %vm541_vm4 = vcmp.eq.s32.totalorder (!%p3163_p5), %v536_v14, 1  ;;  %vm542_vm6 = vcmp.eq.s32.totalorder (!%p3163_p5), %v540_v15, 1 }
  0x1a   : > { %v513_v6 = vld [vmem:[%s4559_s0 + $0x18] sm:$0xff] (!%p3163_p5)  ;;  %vm543_vm7 = vmor (!%p3163_p5), %vm523_vm2, %vm541_vm4 }
  0x1b   : > { %517 = vst [vmem:[%s4568_s9 + $0x18] sm:$0xff] (!%p3163_p5), %v513_v6  ;;  %v547_v17 = vsel (!%p3163_p5), %vm543_vm7, -1e+30, %v3822_v16  ;;  %vm544_vm8 = vmor (!%p3163_p5), %vm524_vm3, %vm541_vm4 }
  0x1c   : > { %552 = vst.msk [vmem:[#allocation2] sm:$0xff] (!%p3163_p5), %vm551_vm5, %v547_v17  ;;  %v548_v18 = vsel (!%p3163_p5), %vm544_vm8, -1e+30, %v3822_v16  ;;  %vm545_vm9 = vmor (!%p3163_p5), %vm523_vm2, %vm542_vm6 }
  0x1d   : > { %553 = vst.msk [vmem:[#allocation2 + $0x8] sm:$0xff] (!%p3163_p5), %vm551_vm5, %v548_v18  ;;  %v549_v19 = vsel (!%p3163_p5), %vm545_vm9, -1e+30, %v3822_v16  ;;  %vm546_vm10 = vmor (!%p3163_p5), %vm524_vm3, %vm542_vm6 }
  0x1e   : > { %554 = vst.msk [vmem:[#allocation2 + $0x10] sm:$0xff] (!%p3163_p5), %vm551_vm5, %v549_v19  ;;  %v550_v20 = vsel (!%p3163_p5), %vm546_vm10, -1e+30, %v3822_v16 }
  0x1f   : > { %555 = vst.msk [vmem:[#allocation2 + $0x18] sm:$0xff] %vm551_vm5, %v550_v20 }
  0x20 PF: > { %v3561_v21 = vld [vmem:[%s3915_s26 + $0x4] ss:$12 sps:$4 sm:$0xff]   ;;  %v3563_v22 = vld [vmem:[%s3915_s26] ss:$12 sps:$4 sm:$0xff]   ;;  %v3823_v23 = vmov 0   ;;  %v3824_v44 = vmov 0.0   ;;  %v609_v45 = vlaneseq }
  0x21   : > { %784 = vmatprep.mubr.bf16.mxu0 %v3823_v23  ;;  %752 = vmatprep.subr.bf16.mxu0 %v3561_v21  ;;  %v3564_v24 = vld [vmem:[%s3915_s26 + $0x1c] ss:$12 sps:$4 sm:$0xff]   ;;  %v3566_v25 = vld [vmem:[%s3915_s26 + $0x18] ss:$12 sps:$4 sm:$0xff]   ;;  %v3567_v26 = vld [vmem:[%s3915_s26 + $0x34] ss:$12 sps:$4 sm:$0xff]  }
  0x22   : > { %753 = vmatpush1.bf16.msra.mxu0 %v3563_v22  ;;  %v3569_v27 = vld [vmem:[%s3915_s26 + $0x30] ss:$12 sps:$4 sm:$0xff]   ;;  %v3570_v28 = vld [vmem:[%s3915_s26 + $0x4c] ss:$12 sps:$4 sm:$0xff]   ;;  %v556_v29 = vld [vmem:[%s4568_s9] sm:$0xff]  ;;  %vm3825_vm11 = vmmov 0  }
  0x23   : > { %754 = vmatprep.subr.bf16.mxu0 %v3564_v24  ;;  %v3572_v30 = vld [vmem:[%s3915_s26 + $0x48] ss:$12 sps:$4 sm:$0xff]   ;;  %v3573_v32 = vld [vmem:[%s3915_s26 + $0x64] ss:$12 sps:$4 sm:$0xff]   ;;  %v3575_v34 = vld [vmem:[%s3915_s26 + $0x60] ss:$12 sps:$4 sm:$0xff]  }
  0x24   : > { %v557_v31 = vld [vmem:[%s4568_s9 + $0x8] sm:$0xff]  ;;  %v3578_v36 = vld [vmem:[%s3915_s26 + $0x78] ss:$12 sps:$4 sm:$0xff]   ;;  %v3579_v37 = vld [vmem:[%s3915_s26 + $0x94] ss:$12 sps:$4 sm:$0xff]   ;;  %v4004_v46 = vshrl.u32 %v609_v45, 7 }
  0x25   : > { %v560_v33 = vpack.c.bf16 %v557_v31, %v556_v29  ;;  %v3576_v35 = vld [vmem:[%s3915_s26 + $0x7c] ss:$12 sps:$4 sm:$0xff]   ;;  %v3582_v39 = vld [vmem:[%s3915_s26 + $0xac] ss:$12 sps:$4 sm:$0xff]   ;;  %v558_v41 = vld [vmem:[%s4568_s9 + $0x10] sm:$0xff]  ;;  %vm864_vm12 = vcmask 261120  }
  0x26   : > { %755 = vmatpush1.bf16.msra.mxu0 %v3566_v25  ;;  %v3581_v38 = vld [vmem:[%s3915_s26 + $0x90] ss:$12 sps:$4 sm:$0xff]   ;;  %v3584_v40 = vld [vmem:[%s3915_s26 + $0xa8] ss:$12 sps:$4 sm:$0xff]   ;;  %v4007_v47 = vsub.s32 0, %v4004_v46  ;;  %v4013_v49 = vsub.s32 1, %v4004_v46 }
  0x27   : > { %756 = vmatprep.subr.bf16.mxu0 %v3567_v26  ;;  %3407 = vmatprep.mubr.bf16.mxu1 %v560_v33  ;;  %v559_v42 = vld [vmem:[%s4568_s9 + $0x18] sm:$0xff]  ;;  %v4010_v48 = vld [vmem:[%s3930_s3] sm:$0x7]  ;;  %v3585_v16 = vld [vmem:[%s3915_s26 + $0x8] ss:$12 sps:$4 sm:$0xff]   ;;  %vm959_vm13 = vcmask 130048  }
  0x28   : > { %v3998_v43 = vpack.c.bf16 %v559_v42, %v558_v41  ;;  %v612_v50 = vrot.slane %v4010_v48, %v4007_v47  ;;  %v616_v52 = vrot.slane %v4010_v48, %v4013_v49  ;;  %v3586_v17 = vld [vmem:[%s3915_s26 + $0x20] ss:$12 sps:$4 sm:$0xff]   ;;  %3391 = vmatprep.subr.bf16.mxu1 %v3585_v16  ;;  %v3587_v18 = vld [vmem:[%s3915_s26 + $0x38] ss:$12 sps:$4 sm:$0xff]   ;;  %v3588_v19 = vld [vmem:[%s3915_s26 + $0x50] ss:$12 sps:$4 sm:$0xff]  }
  0x29   : > { %3392 = vmatpush3.bf16.msra.mxu1 %v3585_v16  ;;  %v3589_v20 = vld [vmem:[%s3915_s26 + $0x68] ss:$12 sps:$4 sm:$0xff]   ;;  %v3590_v21 = vld [vmem:[%s3915_s26 + $0x80] ss:$12 sps:$4 sm:$0xff]   ;;  %v3591_v22 = vld [vmem:[%s3915_s26 + $0x98] ss:$12 sps:$4 sm:$0xff]  }
  0x2a   : > { %757 = vmatpush1.bf16.msra.mxu0 %v3569_v27  ;;  %3393 = vmatprep.subr.bf16.mxu1 %v3586_v17  ;;  %v3592_v24 = vld [vmem:[%s3915_s26 + $0xb0] ss:$12 sps:$4 sm:$0xff]   ;;  %v4053_v25 = vld [vmem:[#allocation2] sm:$0xff]  ;;  %v4055_v27 = vld [vmem:[#allocation2 + $0x8] sm:$0xff]  ;;  %s3826_s3 = smov 96   ;;  %s3827_s26 = smov 64  }
  0x2b   : > { %758 = vmatprep.subr.bf16.mxu0 %v3570_v28  ;;  %s3828_s18 = smov 32   ;;  %vm566_vm14 = vcmask 122880   ;;  %vm1878_vm15 = vcmask 523264   ;;  %vm1883_vm0 = vcmask 785408  }
  0x2d   : > { %3394 = vmatpush3.bf16.msra.mxu1 %v3586_v17 }
  0x2e   : > { %759 = vmatpush1.bf16.msra.mxu0 %v3572_v30  ;;  %3395 = vmatprep.subr.bf16.mxu1 %v3587_v18 }
  0x2f   : > { %760 = vmatprep.subr.bf16.mxu0 %v3573_v32 }
  0x31   : > { %3396 = vmatpush3.bf16.msra.mxu1 %v3587_v18 }
  0x32   : > { %761 = vmatpush1.bf16.msra.mxu0 %v3575_v34  ;;  %3397 = vmatprep.subr.bf16.mxu1 %v3588_v19  ;;  %v4060_v34 = vld [vmem:[#allocation2 + $0x10] sm:$0xff] }
  0x33   : > { %762 = vmatprep.subr.bf16.mxu0 %v3576_v35 }
  0x35   : > { %3398 = vmatpush3.bf16.msra.mxu1 %v3588_v19 }
  0x36   : > { %763 = vmatpush1.bf16.msra.mxu0 %v3578_v36  ;;  %3399 = vmatprep.subr.bf16.mxu1 %v3589_v20 }
  0x37   : > { %764 = vmatprep.subr.bf16.mxu0 %v3579_v37  ;;  %v4063_v37 = vld [vmem:[#allocation2 + $0x18] sm:$0xff] }
  0x39   : > { %3400 = vmatpush3.bf16.msra.mxu1 %v3589_v20 }
  0x3a   : > { %765 = vmatpush1.bf16.msra.mxu0 %v3581_v38  ;;  %3401 = vmatprep.subr.bf16.mxu1 %v3590_v21 }
  0x3b   : > { %766 = vmatprep.subr.bf16.mxu0 %v3582_v39 }
  0x3d   : > { %3402 = vmatpush3.bf16.msra.mxu1 %v3590_v21 }
  0x3e   : > { %767 = vmatpush1.bf16.msra.mxu0 %v3584_v40  ;;  %3403 = vmatprep.subr.bf16.mxu1 %v3591_v22 }
  0x3f   : > { %3411 = vmatprep.subr.bf16.mxu0 %v3824_v44 }
  0x41   : > { %785 = vmatmul.mubr.bf16.vlgmr.msra.gmra.mrb[0].mxu0 %v560_v33  ;;  %3404 = vmatpush3.bf16.msra.mxu1 %v3591_v22 }
  0x42   : > { %794 = vmatprep.mubr.bf16.mxu0 %v3823_v23  ;;  %3405 = vmatprep.subr.bf16.mxu1 %v3592_v24 }
  0x45   : > { %3406 = vmatpush3.bf16.msra.mxu1 %v3592_v24 }
  0x46   : > { %3423 = vmatprep.subr.bf16.mxu1 %v3824_v44 }
  0x48   : > { %3408 = vmatmul.mubr.bf16.vlgmr.msra.gmra.mrb[0].mxu1 %v3998_v43 }
  0x49   : > { %795 = vmatmul.mubr.bf16.gmra.mrb[4].mxu0 %v3998_v43  ;;  %3425 = vmatprep.mubr.msk.bf16.mxu1 %vm3825_vm11, %v3824_v44 }
  0x4a   : > { %3413 = vmatprep.mubr.msk.bf16.mxu0 %vm3825_vm11, %v3824_v44 }
 0x114   : > { %v786_v51 = vpop.f32.mrb[0].mxu0 }
 0x115   : > { %v787_v53 = vadd.f32 %v786_v51, %v612_v50  ;;  %v788_v54 = vpop.f32.mrb[1].mxu0 }
 0x116   : > { %v790_v55 = vpop.f32.mrb[2].mxu0  ;;  %v789_v58 = vadd.f32 %v788_v54, %v616_v52 }
 0x117   : > { %v791_v56 = vadd.f32 %v790_v55, %v612_v50  ;;  %v792_v57 = vpop.f32.mrb[3].mxu0  ;;  %v854_v60 = vmul.f32 0.17677669, %v787_v53 }
 0x118   : > { %v793_v59 = vadd.f32 %v792_v57, %v616_v52 }
 0x119   : > { %v855_v61 = vmul.f32 0.17677669, %v791_v56 }
 0x11a   : > { %v4019_v62 = vpack.c.bf16 %v793_v59, %v789_v58 }
 0x11b   : > { %v4021_v63 = vpack.c.bf16 %v855_v61, %v854_v60 }
 0x11c   : > { %v796_v2 = vpop.f32.mrb[4].mxu0  ;;  %v869_v3 = vsel %vm864_vm12, %v4019_v62, 0 }
 0x11d   : > { %v797_v4 = vadd.f32 %v796_v2, %v612_v50  ;;  %v798_v5 = vpop.f32.mrb[5].mxu0  ;;  %3412 = vmatpush3.bf16.xpose.msra.mxu0 %v869_v3 }
 0x11e   : > { %v799_v6 = vadd.f32 %v798_v5, %v616_v52  ;;  %v800_v7 = vpop.f32.mrb[6].mxu0  ;;  %3417 = vmatprep.subr.bf16.mxu0 %v3824_v44  ;;  %v4073_v5 = vsub.s32 2, %v4004_v46 }
 0x11f   : > { %v856_v8 = vmul.f32 0.17677669, %v797_v4  ;;  %v801_v9 = vadd.f32 %v800_v7, %v612_v50  ;;  %v802_v10 = vpop.f32.mrb[7].mxu0 }
 0x120   : > { %v803_v11 = vadd.f32 %v802_v10, %v616_v52 }
 0x121   : > { %v857_v12 = vmul.f32 0.17677669, %v801_v9 }
 0x122   : > { %v4026_v13 = vpack.c.bf16 %v803_v11, %v799_v6  ;;  %v3409_v6 = vpop.f32.mrb[0].mxu1 }
 0x123   : > { %v4028_v14 = vpack.c.bf16 %v857_v12, %v856_v8  ;;  %v839_v7 = vpop.f32.mrb[1].mxu1  ;;  %v620_v8 = vrot.slane %v4010_v48, %v4073_v5 }
 0x124   : > { %3414 = vmatmul.mubr.msk.bf16.vlgmr.msra.gmra.mrb[8].mxu0 %vm864_vm12, %v4021_v63  ;;  %v916_v15 = vsel %vm864_vm12, %v4026_v13, 0  ;;  %v3410_v9 = vpop.f32.mrb[2].mxu1 }
 0x125   : > { %3418 = vmatpush3.bf16.xpose.msra.mxu0 %v916_v15  ;;  %3419 = vmatprep.mubr.msk.bf16.mxu0 %vm3825_vm11, %v3824_v44  ;;  %v842_v10 = vpop.f32.mrb[3].mxu1  ;;  %v840_v11 = vadd.f32 %v839_v7, %v620_v8  ;;  %v848_v16 = vadd.f32 %v3409_v6, %v620_v8  ;;  %v851_v17 = vadd.f32 %v3410_v9, %v620_v8 }
 0x126   : > { %3429 = vmatprep.subr.bf16.mxu0 %v3824_v44  ;;  %v843_v12 = vadd.f32 %v842_v10, %v620_v8 }
 0x127   : > { %v4085_v48 = vpack.c.bf16 %v851_v17, %v848_v16 }
 0x128   : > { %v4079_v15 = vpack.c.bf16 %v843_v12, %v840_v11 }
 0x12a   : > { %3424 = vmatpush3.bf16.msra.mxu1 %v4079_v15 }
 0x12b   : > { %3435 = vmatprep.subr.bf16.mxu1 %v3824_v44 }
 0x12c   : > { %3420 = vmatmul.mubr.msk.bf16.vlgmr.msra.gmra.mrb[12].mxu0 %vm864_vm12, %v4028_v14 }
 0x12d   : > { %3431 = vmatprep.mubr.msk.bf16.mxu0 %vm3825_vm11, %v3824_v44  ;;  %3430 = vmatpush3.bf16.msra.mxu0 %v4085_v48 }
 0x12e   : > { %3441 = vmatprep.subr.bf16.mxu0 %v3824_v44 }
 0x1f7   : > { %v905_v26 = vpop.f32.mrb[8].mxu0 }
 0x1f8   : > { %v906_v28 = vadd.f32 %v905_v26, %v4053_v25  ;;  %v3415_v29 = vpop.f32.mrb[9].mxu0 }
 0x1f9   : > { %v908_v30 = vpop.f32.mrb[10].mxu0 }
 0x1fa   : > { %v909_v31 = vadd.f32 %v908_v30, %v4055_v27  ;;  %v3416_v32 = vpop.f32.mrb[11].mxu0  ;;  %v960_v33 = vsel %vm959_vm13, %v906_v28, -inf }
 0x1fb   : > { %961 = vmax.xlane.f32.xlu0 %v960_v33 }
 0x1fc   : > { %v963_v35 = vsel %vm959_vm13, %v909_v31, -inf }
 0x1ff   : > { %964 = vmax.xlane.f32.xlu0 %v963_v35  ;;  %v952_v36 = vpop.f32.mrb[12].mxu0 }
 0x200   : > { %v953_v38 = vadd.f32 %v952_v36, %v4060_v34  ;;  %v3421_v39 = vpop.f32.mrb[13].mxu0 }
 0x201   : > { %v955_v40 = vpop.f32.mrb[14].mxu0 }
 0x202   : > { %v966_v41 = vsel %vm959_vm13, %v953_v38, -inf  ;;  %v956_v42 = vadd.f32 %v955_v40, %v4063_v37  ;;  %v3422_v43 = vpop.f32.mrb[15].mxu0 }
 0x203   : > { %967 = vmax.xlane.f32.xlu1 %v966_v41 }
 0x204   : > { %v969_v45 = vsel %vm959_vm13, %v956_v42, -inf }
 0x207   : > { %970 = vmax.xlane.f32.xlu1 %v969_v45 }
 0x288   : > { %v962_v50 = vpop.xlane.xlu0 %961 }
 0x289   : > { %v972_v51 = vsub.f32 %v906_v28, %v962_v50 }
 0x28b   : > { %v976_v52 = vmul.f32 1.442695, %v972_v51 }
 0x28c   : > { %v965_v53 = vpop.xlane.xlu0 %964 }
 0x28d   : > { %3681 = vpow2.f32 %v976_v52  ;;  %v973_v54 = vsub.f32 %v909_v31, %v965_v53 }
 0x28f   : > { %v978_v55 = vmul.f32 1.442695, %v973_v54 }
 0x290   : > { %v968_v56 = vpop.xlane.xlu1 %967 }
 0x291   : > { %3683 = vpow2.f32 %v978_v55  ;;  %v974_v57 = vsub.f32 %v953_v38, %v968_v56 }
 0x293   : > { %v980_v58 = vmul.f32 1.442695, %v974_v57 }
 0x294   : > { %v971_v18 = vpop.xlane.xlu1 %970 }
 0x295   : > { %3685 = vpow2.f32 %v980_v58  ;;  %v975_v19 = vsub.f32 %v956_v42, %v971_v18 }
 0x297   : > { %v3682_v59 = vpop.eup %3681  ;;  %v982_v20 = vmul.f32 1.442695, %v975_v19 }
 0x298   : > { %v984_v60 = vsel %vm959_vm13, %v3682_v59, 0.0 }
 0x299   : > { %985 = vadd.xlane.f32.xlu0 %v984_v60  ;;  %3687 = vpow2.f32 %v982_v20 }
 0x29b   : > { %v3684_v61 = vpop.eup %3683 }
 0x29c   : > { %v987_v2 = vsel %vm959_vm13, %v3684_v61, 0.0 }
 0x29d   : > { %988 = vadd.xlane.f32.xlu1 %v987_v2 }
 0x29f   : > { %v3686_v3 = vpop.eup %3685 }
 0x2a0   : > { %v990_v4 = vsel %vm959_vm13, %v3686_v3, 0.0 }
 0x2a1   : > { %991 = vadd.xlane.f32.xlu0 %v990_v4 }
 0x2a3   : > { %v3688_v21 = vpop.eup %3687 }
 0x2a4   : > { %v993_v22 = vsel %vm959_vm13, %v3688_v21, 0.0 }
 0x2ae   : > { %1151 = vrot.lane.b32.xlu1 %v4026_v13, %s3826_s3 }
 0x2b7   : > { %1098 = vrot.lane.b32.xlu0 %v4019_v62, %s3826_s3 }
 0x2d2   : > { %994 = vadd.xlane.f32.xlu1 %v993_v22 }
 0x2e3   : > { %1095 = vrot.lane.b32.xlu1 %v4021_v63, %s3826_s3 }
 0x2e7   : > { %1148 = vrot.lane.b32.xlu1 %v4028_v14, %s3826_s3 }
 0x326   : > { %v986_v24 = vpop.xlane.xlu0 %985 }
 0x327   : > { %3689 = vrcp.f32 %v986_v24 }
 0x32a   : > { %v989_v26 = vpop.xlane.xlu1 %988 }
 0x32b   : > { %3691 = vrcp.f32 %v989_v26 }
 0x32e   : > { %v992_v28 = vpop.xlane.xlu0 %991  ;;  %v1152_v38 = vpop.permute.xlu1 %1151 }
 0x32f   : > { %3693 = vrcp.f32 %v992_v28  ;;  %v1157_v51 = vsel %vm864_vm12, %v1152_v38, 0 }
 0x331   : > { %v3690_v29 = vpop.eup %3689 }
 0x332   : > { %v1000_v31 = vmul.f32 %v3690_v29, %v3682_v59  ;;  %v1099_v33 = vpop.permute.xlu0 %1098 }
 0x333   : > { %v1104_v36 = vsel %vm864_vm12, %v1099_v33, 0 }
 0x335   : > { %v3692_v30 = vpop.eup %3691 }
 0x336   : > { %v1001_v32 = vmul.f32 %v3692_v30, %v3684_v61 }
 0x338   : > { %v1004_v35 = vpack.c.bf16 %v1001_v32, %v1000_v31 }
 0x339   : > { %v3694_v41 = vpop.eup %3693 }
 0x33a   : > { %3426 = vmatmul.mubr.msk.bf16.vlgmr.msra.gmra.mrb[4].mxu1 %vm959_vm13, %v1004_v35  ;;  %v1002_v43 = vmul.f32 %v3694_v41, %v3686_v3 }
 0x33b   : > { %3436 = vmatpush3.bf16.xpose.msra.mxu1 %v1104_v36  ;;  %3437 = vmatprep.mubr.msk.bf16.mxu1 %vm3825_vm11, %v3824_v44 }
 0x33c   : > { %3447 = vmatprep.subr.bf16.mxu1 %v3824_v44 }
 0x35f   : > { %v995_v39 = vpop.xlane.xlu1 %994 }
 0x360   : > { %3695 = vrcp.f32 %v995_v39 }
 0x363   : > { %v1096_v40 = vpop.permute.xlu1 %1095 }
 0x364   : > { %3438 = vmatmul.mubr.msk.bf16.vlgmr.msra.gmra.mrb[8].mxu1 %vm864_vm12, %v1096_v40 }
 0x365   : > { %3449 = vmatprep.mubr.msk.bf16.mxu1 %vm3825_vm11, %v3824_v44 }
 0x367   : > { %v1149_v52 = vpop.permute.xlu1 %1148 }
 0x36a   : > { %v3696_v42 = vpop.eup %3695 }
 0x36b   : > { %v1003_v45 = vmul.f32 %v3696_v42, %v3688_v21 }
 0x36d   : > { %v1005_v50 = vpack.c.bf16 %v1003_v45, %v1002_v43 }
 0x36f   : > { %3432 = vmatmul.mubr.msk.bf16.vlgmr.msra.gmra.mrb[16].mxu0 %vm959_vm13, %v1005_v50 }
 0x370   : > { %3442 = vmatpush3.bf16.xpose.msra.mxu0 %v1157_v51  ;;  %3443 = vmatprep.mubr.msk.bf16.mxu0 %vm3825_vm11, %v3824_v44 }
 0x371   : > { %3453 = vmatprep.subr.bf16.mxu0 %v3824_v44 }
 0x377   : > { %3444 = vmatmul.mubr.msk.bf16.vlgmr.msra.gmra.mrb[20].mxu0 %vm864_vm12, %v1149_v52 }
 0x378   : > { %3455 = vmatprep.mubr.msk.bf16.mxu0 %vm3825_vm11, %v3824_v44 }
 0x40d   : > { %v4110_v53 = vpop.f32.mrb[4].mxu1 }
 0x40e   : > { %v3427_v54 = vpop.f32.mrb[5].mxu1 }
 0x40f   : > { %v4112_v55 = vpop.f32.mrb[6].mxu1 }
 0x410   : > { %v3428_v56 = vpop.f32.mrb[7].mxu1 }
 0x437   : > { %v1140_v57 = vpop.f32.mrb[8].mxu1 }
 0x438   : > { %v1141_v58 = vadd.f32 %v1140_v57, %v4053_v25  ;;  %v3439_v59 = vpop.f32.mrb[9].mxu1 }
 0x439   : > { %v1143_v60 = vpop.f32.mrb[10].mxu1 }
 0x43a   : > { %v1144_v61 = vadd.f32 %v1143_v60, %v4055_v27  ;;  %v3440_v2 = vpop.f32.mrb[11].mxu1  ;;  %v1200_v3 = vsel %vm959_vm13, %v1141_v58, -inf }
 0x43b   : > { %1201 = vmax.xlane.f32.xlu0 %v1200_v3 }
 0x43c   : > { %v1203_v4 = vsel %vm959_vm13, %v1144_v61, -inf }
 0x43d   : > { %1204 = vmax.xlane.f32.xlu1 %v1203_v4 }
 0x442   : > { %v4118_v6 = vpop.f32.mrb[16].mxu0 }
 0x443   : > { %v3433_v7 = vpop.f32.mrb[17].mxu0 }
 0x444   : > { %v4120_v8 = vpop.f32.mrb[18].mxu0 }
 0x445   : > { %v3434_v9 = vpop.f32.mrb[19].mxu0 }
 0x44a   : > { %v1193_v10 = vpop.f32.mrb[20].mxu0 }
 0x44b   : > { %v1194_v11 = vadd.f32 %v1193_v10, %v4060_v34  ;;  %v3445_v12 = vpop.f32.mrb[21].mxu0 }
 0x44c   : > { %v1196_v16 = vpop.f32.mrb[22].mxu0 }
 0x44d   : > { %v1197_v17 = vadd.f32 %v1196_v16, %v4063_v37  ;;  %v3446_v18 = vpop.f32.mrb[23].mxu0  ;;  %v1206_v19 = vsel %vm959_vm13, %v1194_v11, -inf }
 0x44e   : > { %1207 = vmax.xlane.f32.xlu0 %v1206_v19 }
 0x44f   : > { %v1209_v20 = vsel %vm959_vm13, %v1197_v17, -inf }
 0x452   : > { %1210 = vmax.xlane.f32.xlu0 %v1209_v20 }
 0x4c8   : > { %v1202_v21 = vpop.xlane.xlu0 %1201 }
 0x4c9   : > { %v1212_v22 = vsub.f32 %v1141_v58, %v1202_v21 }
 0x4ca   : > { %v1205_v24 = vpop.xlane.xlu1 %1204 }
 0x4cb   : > { %v1216_v26 = vmul.f32 1.442695, %v1212_v22  ;;  %v1213_v28 = vsub.f32 %v1144_v61, %v1205_v24 }
 0x4cd   : > { %3697 = vpow2.f32 %v1216_v26  ;;  %v1218_v29 = vmul.f32 1.442695, %v1213_v28 }
 0x4cf   : > { %3699 = vpow2.f32 %v1218_v29 }
 0x4d7   : > { %v3698_v30 = vpop.eup %3697 }
 0x4d8   : > { %v1224_v31 = vsel %vm959_vm13, %v3698_v30, 0.0 }
 0x4d9   : > { %v3700_v32 = vpop.eup %3699  ;;  %1225 = vadd.xlane.f32.xlu0 %v1224_v31 }
 0x4da   : > { %v1227_v33 = vsel %vm959_vm13, %v3700_v32, 0.0 }
 0x4db   : > { %1228 = vadd.xlane.f32.xlu1 %v1227_v33  ;;  %v1208_v35 = vpop.xlane.xlu0 %1207 }
 0x4dc   : > { %v1214_v36 = vsub.f32 %v1194_v11, %v1208_v35 }
 0x4de   : > { %v1220_v38 = vmul.f32 1.442695, %v1214_v36 }
 0x4df   : > { %v1211_v41 = vpop.xlane.xlu0 %1210 }
 0x4e0   : > { %3701 = vpow2.f32 %v1220_v38  ;;  %v1215_v42 = vsub.f32 %v1197_v17, %v1211_v41 }
 0x4e2   : > { %v1222_v43 = vmul.f32 1.442695, %v1215_v42 }
 0x4e4   : > { %3703 = vpow2.f32 %v1222_v43 }
 0x4ea   : > { %v3702_v39 = vpop.eup %3701 }
 0x4eb   : > { %v1230_v40 = vsel %vm959_vm13, %v3702_v39, 0.0 }
 0x4ec   : > { %1295 = vrot.lane.b32.xlu1 %v4085_v48, %s3826_s3  ;;  %1231 = vadd.xlane.f32.xlu0 %v1230_v40 }
 0x4ee   : > { %v3704_v45 = vpop.eup %3703 }
 0x4ef   : > { %v1233_v50 = vsel %vm959_vm13, %v3704_v45, 0.0 }
 0x4f0   : > { %1344 = vrot.lane.b32.xlu1 %v4019_v62, %s3827_s26 }
 0x502   : > { %1247 = vrot.lane.b32.xlu0 %v4079_v15, %s3826_s3 }
 0x506   : > { %1342 = vrot.lane.b32.xlu0 %v4021_v63, %s3827_s26 }
 0x514   : > { %1234 = vadd.xlane.f32.xlu1 %v1233_v50 }
 0x525   : > { %1395 = vrot.lane.b32.xlu1 %v4026_v13, %s3827_s26 }
 0x529   : > { %1393 = vrot.lane.b32.xlu1 %v4028_v14, %s3827_s26 }
 0x566   : > { %v1226_v54 = vpop.xlane.xlu0 %1225 }
 0x568   : > { %v1229_v51 = vpop.xlane.xlu1 %1228 }
 0x569   : > { %3705 = vrcp.f32 %v1229_v51 }
 0x56a   : > { %3707 = vrcp.f32 %v1226_v54 }
 0x56c   : > { %v1296_v52 = vpop.permute.xlu1 %1295 }
 0x56d   : > { %3454 = vmatpush3.bf16.msra.mxu0 %v1296_v52 }
 0x56e   : > { %3465 = vmatprep.subr.bf16.mxu0 %v3824_v44 }
 0x570   : > { %v1345_v3 = vpop.permute.xlu1 %1344 }
 0x571   : > { %v1350_v4 = vsel %vm864_vm12, %v1345_v3, 0 }
 0x573   : > { %v3706_v56 = vpop.eup %3705 }
 0x574   : > { %v3708_v58 = vpop.eup %3707  ;;  %v1241_v59 = vmul.f32 %v3706_v56, %v3700_v32 }
 0x575   : > { %v1240_v60 = vmul.f32 %v3708_v58, %v3698_v30 }
 0x577   : > { %v1244_v2 = vpack.c.bf16 %v1241_v59, %v1240_v60 }
 0x579   : > { %v1232_v57 = vpop.xlane.xlu0 %1231 }
 0x57a   : > { %3709 = vrcp.f32 %v1232_v57 }
 0x57d   : > { %v1248_v61 = vpop.permute.xlu0 %1247 }
 0x57e   : > { %3448 = vmatpush3.bf16.msra.mxu1 %v1248_v61 }
 0x57f   : > { %3459 = vmatprep.subr.bf16.mxu1 %v3824_v44 }
 0x581   : > { %3450 = vmatmul.mubr.msk.bf16.vlgmr.msra.gmra.mrb[12].mxu1 %vm959_vm13, %v1244_v2  ;;  %v1343_v7 = vpop.permute.xlu0 %1342 }
 0x582   : > { %3461 = vmatprep.mubr.msk.bf16.mxu1 %vm3825_vm11, %v3824_v44 }
 0x584   : > { %v3710_v10 = vpop.eup %3709 }
 0x585   : > { %v1242_v12 = vmul.f32 %v3710_v10, %v3702_v39 }
 0x587   : > { %3460 = vmatpush3.bf16.xpose.msra.mxu1 %v1350_v4 }
 0x588   : > { %3471 = vmatprep.subr.bf16.mxu1 %v3824_v44 }
 0x58e   : > { %3462 = vmatmul.mubr.msk.bf16.vlgmr.msra.gmra.mrb[16].mxu1 %vm864_vm12, %v1343_v7 }
 0x58f   : > { %3473 = vmatprep.mubr.msk.bf16.mxu1 %vm3825_vm11, %v3824_v44 }
 0x5a1   : > { %v1235_v9 = vpop.xlane.xlu1 %1234 }
 0x5a2   : > { %3711 = vrcp.f32 %v1235_v9 }
 0x5a5   : > { %v1396_v17 = vpop.permute.xlu1 %1395 }
 0x5a6   : > { %v1401_v19 = vsel %vm864_vm12, %v1396_v17, 0 }
 0x5a9   : > { %v1394_v20 = vpop.permute.xlu1 %1393 }
 0x5ac   : > { %v3712_v11 = vpop.eup %3711 }
 0x5ad   : > { %v1243_v16 = vmul.f32 %v3712_v11, %v3704_v45 }
 0x5af   : > { %v1245_v18 = vpack.c.bf16 %v1243_v16, %v1242_v12 }
 0x5b1   : > { %3456 = vmatmul.mubr.msk.bf16.vlgmr.msra.gmra.mrb[24].mxu0 %vm959_vm13, %v1245_v18 }
 0x5b2   : > { %3466 = vmatpush3.bf16.xpose.msra.mxu0 %v1401_v19  ;;  %3467 = vmatprep.mubr.msk.bf16.mxu0 %vm3825_vm11, %v3824_v44 }
 0x5b3   : > { %3477 = vmatprep.subr.bf16.mxu0 %v3824_v44 }
 0x5b9   : > { %3468 = vmatmul.mubr.msk.bf16.vlgmr.msra.gmra.mrb[28].mxu0 %vm864_vm12, %v1394_v20 }
 0x5ba   : > { %3479 = vmatprep.mubr.msk.bf16.mxu0 %vm3825_vm11, %v3824_v44 }
 0x654   : > { %v4160_v21 = vpop.f32.mrb[12].mxu1 }
 0x655   : > { %v3451_v22 = vpop.f32.mrb[13].mxu1 }
 0x656   : > { %v4162_v24 = vpop.f32.mrb[14].mxu1 }
 0x657   : > { %v3452_v26 = vpop.f32.mrb[15].mxu1 }
 0x661   : > { %v1386_v28 = vpop.f32.mrb[16].mxu1 }
 0x662   : > { %v1387_v29 = vadd.f32 %v1386_v28, %v4053_v25  ;;  %v3463_v30 = vpop.f32.mrb[17].mxu1 }
 0x663   : > { %v1389_v31 = vpop.f32.mrb[18].mxu1 }
 0x664   : > { %v1390_v32 = vadd.f32 %v1389_v31, %v4055_v27  ;;  %v3464_v33 = vpop.f32.mrb[19].mxu1  ;;  %v1444_v35 = vsel %vm959_vm13, %v1387_v29, -inf }
 0x665   : > { %1445 = vmax.xlane.f32.xlu0 %v1444_v35 }
 0x666   : > { %v1447_v36 = vsel %vm959_vm13, %v1390_v32, -inf }
 0x667   : > { %1448 = vmax.xlane.f32.xlu1 %v1447_v36 }
 0x684   : > { %v4168_v38 = vpop.f32.mrb[24].mxu0 }
 0x685   : > { %v3457_v39 = vpop.f32.mrb[25].mxu0 }
 0x686   : > { %v4170_v40 = vpop.f32.mrb[26].mxu0 }
 0x687   : > { %v3458_v41 = vpop.f32.mrb[27].mxu0 }
 0x68c   : > { %v1437_v42 = vpop.f32.mrb[28].mxu0 }
 0x68d   : > { %v1438_v43 = vadd.f32 %v1437_v42, %v4060_v34  ;;  %v3469_v45 = vpop.f32.mrb[29].mxu0 }
 0x68e   : > { %v1440_v50 = vpop.f32.mrb[30].mxu0 }
 0x68f   : > { %v1441_v51 = vadd.f32 %v1440_v50, %v4063_v37  ;;  %v3470_v52 = vpop.f32.mrb[31].mxu0  ;;  %v1450_v54 = vsel %vm959_vm13, %v1438_v43, -inf }
 0x690   : > { %1451 = vmax.xlane.f32.xlu0 %v1450_v54 }
 0x691   : > { %v1453_v56 = vsel %vm959_vm13, %v1441_v51, -inf }
 0x694   : > { %1454 = vmax.xlane.f32.xlu0 %v1453_v56 }
 0x6f2   : > { %v1446_v57 = vpop.xlane.xlu0 %1445 }
 0x6f3   : > { %v1456_v58 = vsub.f32 %v1387_v29, %v1446_v57 }
 0x6f4   : > { %v1449_v59 = vpop.xlane.xlu1 %1448 }
 0x6f5   : > { %v1460_v60 = vmul.f32 1.442695, %v1456_v58  ;;  %v1457_v61 = vsub.f32 %v1390_v32, %v1449_v59 }
 0x6f7   : > { %3713 = vpow2.f32 %v1460_v60  ;;  %v1462_v2 = vmul.f32 1.442695, %v1457_v61 }
 0x6f9   : > { %3715 = vpow2.f32 %v1462_v2 }
 0x701   : > { %v3714_v3 = vpop.eup %3713 }
 0x702   : > { %v1468_v4 = vsel %vm959_vm13, %v3714_v3, 0.0 }
 0x703   : > { %v3716_v7 = vpop.eup %3715  ;;  %1469 = vadd.xlane.f32.xlu0 %v1468_v4 }
 0x704   : > { %v1471_v9 = vsel %vm959_vm13, %v3716_v7, 0.0 }
 0x705   : > { %1472 = vadd.xlane.f32.xlu1 %v1471_v9 }
 0x716   : > { %1537 = vrot.lane.b32.xlu1 %v4085_v48, %s3827_s26 }
 0x71a   : > { %1586 = vrot.lane.b32.xlu1 %v4019_v62, %s3828_s18 }
 0x71d   : > { %v1452_v10 = vpop.xlane.xlu0 %1451 }
 0x71e   : > { %v1458_v11 = vsub.f32 %v1438_v43, %v1452_v10 }
 0x720   : > { %v1464_v12 = vmul.f32 1.442695, %v1458_v11 }
 0x721   : > { %v1455_v16 = vpop.xlane.xlu0 %1454 }
 0x722   : > { %3717 = vpow2.f32 %v1464_v12  ;;  %v1459_v17 = vsub.f32 %v1441_v51, %v1455_v16 }
 0x724   : > { %v1466_v19 = vmul.f32 1.442695, %v1459_v17 }
 0x726   : > { %3719 = vpow2.f32 %v1466_v19 }
 0x72c   : > { %v3718_v18 = vpop.eup %3717 }
 0x72d   : > { %v1474_v20 = vsel %vm959_vm13, %v3718_v18, 0.0 }
 0x72e   : > { %1475 = vadd.xlane.f32.xlu0 %v1474_v20 }
 0x730   : > { %v3720_v22 = vpop.eup %3719 }
 0x731   : > { %v1477_v26 = vsel %vm959_vm13, %v3720_v22, 0.0 }
 0x73e   : > { %1478 = vadd.xlane.f32.xlu1 %v1477_v26 }
 0x744   : > { %1490 = vrot.lane.b32.xlu0 %v4079_v15, %s3827_s26 }
 0x748   : > { %1584 = vrot.lane.b32.xlu0 %v4021_v63, %s3828_s18 }
 0x74f   : > { %1637 = vrot.lane.b32.xlu1 %v4026_v13, %s3828_s18 }
 0x753   : > { %1635 = vrot.lane.b32.xlu1 %v4028_v14, %s3828_s18 }
 0x790   : > { %v1470_v29 = vpop.xlane.xlu0 %1469 }
 0x792   : > { %v1473_v62 = vpop.xlane.xlu1 %1472 }
 0x793   : > { %3721 = vrcp.f32 %v1473_v62 }
 0x794   : > { %3723 = vrcp.f32 %v1470_v29 }
 0x796   : > { %v1538_v28 = vpop.permute.xlu1 %1537 }
 0x797   : > { %3478 = vmatpush3.bf16.msra.mxu0 %v1538_v28 }
 0x798   : > { %3489 = vmatprep.subr.bf16.mxu0 %v3824_v44 }
 0x79a   : > { %v1587_v13 = vpop.permute.xlu1 %1586 }
 0x79b   : > { %v1592_v14 = vsel %vm864_vm12, %v1587_v13, 0 }
 0x79d   : > { %v3722_v30 = vpop.eup %3721 }
 0x79e   : > { %v3724_v32 = vpop.eup %3723  ;;  %v1485_v33 = vmul.f32 %v3722_v30, %v3716_v7 }
 0x79f   : > { %v1484_v35 = vmul.f32 %v3724_v32, %v3714_v3 }
 0x7a1   : > { %v1488_v36 = vpack.c.bf16 %v1485_v33, %v1484_v35 }
 0x7bb   : > { %v1476_v31 = vpop.xlane.xlu0 %1475 }
 0x7bc   : > { %3725 = vrcp.f32 %v1476_v31 }
 0x7bf   : > { %v1491_v63 = vpop.permute.xlu0 %1490 }
 0x7c0   : > { %3472 = vmatpush3.bf16.msra.mxu1 %v1491_v63 }
 0x7c1   : > { %3483 = vmatprep.subr.bf16.mxu1 %v3824_v44 }
 0x7c3   : > { %3474 = vmatmul.mubr.msk.bf16.vlgmr.msra.gmra.mrb[20].mxu1 %vm959_vm13, %v1488_v36  ;;  %v1585_v41 = vpop.permute.xlu0 %1584 }
 0x7c4   : > { %3485 = vmatprep.mubr.msk.bf16.mxu1 %vm3825_vm11, %v3824_v44 }
 0x7c6   : > { %v3726_v42 = vpop.eup %3725 }
 0x7c7   : > { %v1486_v45 = vmul.f32 %v3726_v42, %v3718_v18 }
 0x7c9   : > { %3484 = vmatpush3.bf16.xpose.msra.mxu1 %v1592_v14 }
 0x7ca   : > { %3495 = vmatprep.subr.bf16.mxu1 %v3824_v44 }
 0x7cb   : > { %v1479_v39 = vpop.xlane.xlu1 %1478 }
 0x7cc   : > { %3727 = vrcp.f32 %v1479_v39 }
 0x7cf   : > { %v1638_v51 = vpop.permute.xlu1 %1637 }
 0x7d0   : > { %3486 = vmatmul.mubr.msk.bf16.vlgmr.msra.gmra.mrb[24].mxu1 %vm864_vm12, %v1585_v41  ;;  %v1643_v54 = vsel %vm864_vm12, %v1638_v51, 0 }
 0x7d1   : > { %3497 = vmatprep.mubr.msk.bf16.mxu1 %vm3825_vm11, %v3824_v44 }
 0x7d3   : > { %v1636_v56 = vpop.permute.xlu1 %1635 }
 0x7d6   : > { %v3728_v43 = vpop.eup %3727 }
 0x7d7   : > { %v1487_v50 = vmul.f32 %v3728_v43, %v3720_v22 }
 0x7d9   : > { %v1489_v52 = vpack.c.bf16 %v1487_v50, %v1486_v45 }
 0x7db   : > { %3480 = vmatmul.mubr.msk.bf16.vlgmr.msra.gmra.mrb[32].mxu0 %vm959_vm13, %v1489_v52  ;;  %v570_v52 = vsel %vm566_vm14, %v3905_v1, inf }
 0x7dc   : > { %3490 = vmatpush3.bf16.xpose.msra.mxu0 %v1643_v54  ;;  %3491 = vmatprep.mubr.msk.bf16.mxu0 %vm3825_vm11, %v3824_v44  ;;  %v567_v54 = vsel %vm566_vm14, %v3900_v0, inf }
 0x7dd   : > { %3501 = vmatprep.subr.bf16.mxu0 %v3824_v44 }
 0x7e3   : > { %3492 = vmatmul.mubr.msk.bf16.vlgmr.msra.gmra.mrb[36].mxu0 %vm864_vm12, %v1636_v56 }
 0x7e4   : > { %3503 = vmatprep.mubr.msk.bf16.mxu0 %vm3825_vm11, %v3824_v44 }
 0x896   : > { %v4210_v57 = vpop.f32.mrb[20].mxu1 }
 0x897   : > { %v3475_v58 = vpop.f32.mrb[21].mxu1 }
 0x898   : > { %v4212_v59 = vpop.f32.mrb[22].mxu1 }
 0x899   : > { %v3476_v60 = vpop.f32.mrb[23].mxu1 }
 0x8a3   : > { %v1628_v61 = vpop.f32.mrb[24].mxu1 }
 0x8a4   : > { %v1629_v2 = vadd.f32 %v1628_v61, %v4053_v25  ;;  %v3487_v3 = vpop.f32.mrb[25].mxu1 }
 0x8a5   : > { %v1631_v4 = vpop.f32.mrb[26].mxu1 }
 0x8a6   : > { %v1632_v7 = vadd.f32 %v1631_v4, %v4055_v27  ;;  %v3488_v9 = vpop.f32.mrb[27].mxu1  ;;  %v1686_v10 = vsel %vm959_vm13, %v1629_v2, -inf  ;;  %v3593_v4 = vld [vmem:[%s3910_s22] sm:$0xff]  }
 0x8a7   : > { %1687 = vmax.xlane.f32.xlu0 %v1686_v10  ;;  %v3595_v9 = vld [vmem:[%s3910_s22 + $0x10] sm:$0xff]   ;;  %v3596_v10 = vld [vmem:[%s3910_s22 + $0x18] sm:$0xff]  }
 0x8a8   : > { %v1689_v11 = vsel %vm959_vm13, %v1632_v7, -inf }
 0x8a9   : > { %1690 = vmax.xlane.f32.xlu1 %v1689_v11  ;;  %v3597_v11 = vld [vmem:[%s3910_s22 + $0x20] sm:$0xff]  }
 0x8ae   : > { %v1577_v44 = vpop.f32.mrb[32].mxu0 }
 0x8af   : > { %v3481_v12 = vpop.f32.mrb[33].mxu0 }
 0x8b0   : > { %v1580_v16 = vpop.f32.mrb[34].mxu0  ;;  %v3599_v12 = vld [vmem:[%s3910_s22 + $0x30] sm:$0xff]  }
 0x8b1   : > { %v3482_v17 = vpop.f32.mrb[35].mxu0 }
 0x8b6   : > { %v1679_v18 = vpop.f32.mrb[36].mxu0 }
 0x8b7   : > { %v1680_v19 = vadd.f32 %v1679_v18, %v4060_v34  ;;  %v3493_v20 = vpop.f32.mrb[37].mxu0 }
 0x8b8   : > { %v1682_v25 = vpop.f32.mrb[38].mxu0 }
 0x8b9   : > { %v1683_v22 = vadd.f32 %v1682_v25, %v4063_v37  ;;  %v3494_v26 = vpop.f32.mrb[39].mxu0  ;;  %v1692_v27 = vsel %vm959_vm13, %v1680_v19, -inf }
 0x8ba   : > { %1693 = vmax.xlane.f32.xlu0 %v1692_v27 }
 0x8bb   : > { %v1695_v62 = vsel %vm959_vm13, %v1683_v22, -inf }
 0x8be   : > { %1696 = vmax.xlane.f32.xlu0 %v1695_v62 }
 0x934   : > { %v1688_v28 = vpop.xlane.xlu0 %1687 }
 0x935   : > { %v1698_v29 = vsub.f32 %v1629_v2, %v1688_v28 }
 0x936   : > { %v1691_v30 = vpop.xlane.xlu1 %1690 }
 0x937   : > { %v1702_v31 = vmul.f32 1.442695, %v1698_v29  ;;  %v1699_v32 = vsub.f32 %v1632_v7, %v1691_v30  ;;  %v3594_v7 = vld [vmem:[%s3910_s22 + $0x8] sm:$0xff]  }
 0x939   : > { %3729 = vpow2.f32 %v1702_v31  ;;  %v1704_v33 = vmul.f32 1.442695, %v1699_v32 }
 0x93b   : > { %3731 = vpow2.f32 %v1704_v33 }
 0x943   : > { %v3730_v34 = vpop.eup %3729 }
 0x944   : > { %v1710_v35 = vsel %vm959_vm13, %v3730_v34, 0.0 }
 0x945   : > { %v3732_v63 = vpop.eup %3731  ;;  %1711 = vadd.xlane.f32.xlu0 %v1710_v35 }
 0x946   : > { %v1713_v37 = vsel %vm959_vm13, %v3732_v63, 0.0 }
 0x947   : > { %1714 = vadd.xlane.f32.xlu1 %v1713_v37  ;;  %v1694_v36 = vpop.xlane.xlu0 %1693 }
 0x948   : > { %v1700_v13 = vsub.f32 %v1680_v19, %v1694_v36  ;;  %v3600_v19 = vld [vmem:[%s3910_s22 + $0x38] sm:$0xff]  }
 0x94a   : > { %v1706_v14 = vmul.f32 1.442695, %v1700_v13 }
 0x94b   : > { %v1697_v39 = vpop.xlane.xlu0 %1696 }
 0x94c   : > { %3733 = vpow2.f32 %v1706_v14  ;;  %v1701_v41 = vsub.f32 %v1683_v22, %v1697_v39 }
 0x94e   : > { %v1708_v42 = vmul.f32 1.442695, %v1701_v41 }
 0x950   : > { %3735 = vpow2.f32 %v1708_v42 }
 0x956   : > { %v3734_v43 = vpop.eup %3733 }
 0x957   : > { %v1716_v45 = vsel %vm959_vm13, %v3734_v43, 0.0 }
 0x958   : > { %1717 = vadd.xlane.f32.xlu0 %v1716_v45 }
 0x95a   : > { %v3736_v50 = vpop.eup %3735 }
 0x95b   : > { %v1719_v51 = vsel %vm959_vm13, %v3736_v50, 0.0 }
 0x95c   : > { %1720 = vadd.xlane.f32.xlu1 %v1719_v51 }
 0x96d   : > { %1779 = vrot.lane.b32.xlu1 %v4085_v48, %s3828_s18 }
 0x96e   : > { %1732 = vrot.lane.b32.xlu0 %v4079_v15, %s3828_s18 }
 0x98d   : > { %571 = vmin.xlane.f32.xlu0 %v570_v52 }
 0x991   : > { %568 = vmin.xlane.f32.xlu1 %v567_v54 }
 0x9a2   : > { %1832 = vrot.lane.b32.xlu1 %v4162_v24, %s3828_s18 }
 0x9a3   : > { %1830 = vrot.lane.b32.xlu0 %v4160_v21, %s3828_s18 }
 0x9a6   : > { %1834 = vrot.lane.b32.xlu1 %v4168_v38, %s3828_s18 }
 0x9a7   : > { %1846 = vrot.lane.b32.xlu0 %v4210_v57, %s3827_s26 }
 0x9aa   : > { %1836 = vrot.lane.b32.xlu1 %v4170_v40, %s3828_s18 }
 0x9ab   : > { %1850 = vrot.lane.b32.xlu0 %v1577_v44, %s3827_s26  ;;  %v3598_v44 = vld [vmem:[%s3910_s22 + $0x28] sm:$0xff]  }
 0x9ae   : > { %1848 = vrot.lane.b32.xlu1 %v4212_v59, %s3827_s26 }
 0x9b2   : > { %1852 = vrot.lane.b32.xlu1 %v1580_v16, %s3827_s26 }
 0x9d2   : > { %v1712_v1 = vpop.xlane.xlu0 %1711 }
 0x9d4   : > { %v1715_v0 = vpop.xlane.xlu1 %1714 }
 0x9d5   : > { %3737 = vrcp.f32 %v1715_v0 }
 0x9d6   : > { %3739 = vrcp.f32 %v1712_v1 }
 0x9df   : > { %v3738_v15 = vpop.eup %3737 }
 0x9e0   : > { %v3740_v21 = vpop.eup %3739  ;;  %v1727_v24 = vmul.f32 %v3738_v15, %v3732_v63 }
 0x9e1   : > { %v1726_v38 = vmul.f32 %v3740_v21, %v3730_v34 }
 0x9e3   : > { %v1730_v57 = vpack.c.bf16 %v1727_v24, %v1726_v38 }
 0x9e5   : > { %v1718_v48 = vpop.xlane.xlu0 %1717 }
 0x9e6   : > { %3741 = vrcp.f32 %v1718_v48 }
 0x9e9   : > { %v1721_v56 = vpop.xlane.xlu1 %1720  ;;  %v1733_v40 = vpop.permute.xlu0 %1732 }
 0x9ea   : > { %3743 = vrcp.f32 %v1721_v56  ;;  %3496 = vmatpush3.bf16.msra.mxu1 %v1733_v40 }
 0x9eb   : > { %3507 = vmatprep.subr.bf16.mxu1 %v3593_v4 }
 0x9ed   : > { %v1780_v58 = vpop.permute.xlu1 %1779  ;;  %3498 = vmatmul.mubr.msk.bf16.vlgmr.msra.gmra.mrb[28].mxu1 %vm959_vm13, %v1730_v57 }
 0x9ee   : > { %3502 = vmatpush3.bf16.msra.mxu0 %v1780_v58  ;;  %3508 = vmatpush3.bf16.msra.mxu1 %v3593_v4 }
 0x9ef   : > { %3509 = vmatprep.subr.bf16.mxu1 %v3594_v7 }
 0x9f0   : > { %v3742_v59 = vpop.eup %3741 }
 0x9f1   : > { %v1728_v61 = vmul.f32 %v3742_v59, %v3734_v43 }
 0x9f2   : > { %3510 = vmatpush3.bf16.msra.mxu1 %v3594_v7 }
 0x9f3   : > { %3511 = vmatprep.subr.bf16.mxu1 %v3595_v9 }
 0x9f4   : > { %v3744_v60 = vpop.eup %3743 }
 0x9f5   : > { %v1729_v2 = vmul.f32 %v3744_v60, %v3736_v50 }
 0x9f6   : > { %3512 = vmatpush3.bf16.msra.mxu1 %v3595_v9  ;;  %v3793_v9 = vld [vmem:[%s4568_s9] sm:$0xff] }
 0x9f7   : > { %v1731_v3 = vpack.c.bf16 %v1729_v2, %v1728_v61  ;;  %3513 = vmatprep.subr.bf16.mxu1 %v3596_v10 }
 0x9f9   : > { %3504 = vmatmul.mubr.msk.bf16.vlgmr.msra.gmra.mrb[40].mxu0 %vm959_vm13, %v1731_v3 }
 0x9fa   : > { %2333 = vmatprep.mubr.bf16.mxu0 %v3823_v23  ;;  %3514 = vmatpush3.bf16.msra.mxu1 %v3596_v10 }
 0x9fb   : > { %3515 = vmatprep.subr.bf16.mxu1 %v3597_v11 }
 0x9fe   : > { %3516 = vmatpush3.bf16.msra.mxu1 %v3597_v11  ;;  %v3794_v11 = vld [vmem:[%s4568_s9 + $0x8] sm:$0xff] }
 0x9ff   : > { %3517 = vmatprep.subr.bf16.mxu1 %v3598_v44 }
 0xa02   : > { %3518 = vmatpush3.bf16.msra.mxu1 %v3598_v44 }
 0xa03   : > { %3519 = vmatprep.subr.bf16.mxu1 %v3599_v12 }
 0xa06   : > { %3520 = vmatpush3.bf16.msra.mxu1 %v3599_v12 }
 0xa07   : > { %3521 = vmatprep.subr.bf16.mxu1 %v3600_v19 }
 0xa0a   : > { %3522 = vmatpush3.bf16.msra.mxu1 %v3600_v19 }
 0xa1a   : > { %v572_v29 = vpop.xlane.xlu0 %571 }
 0xa1b   : > { %v574_v0 = vsub.f32 1.0, %v572_v29  ;;  %v3610_v29 = vld [vmem:[%s3920_s29 + $0x28] ss:$16 sps:$4 sm:$0xff]  }
 0xa1d   : > { %v1895_v21 = vrot.slane %v574_v0, %v4007_v47  ;;  %v3624_v0 = vld [vmem:[%s3920_s29 + $0x6c] ss:$16 sps:$4 sm:$0xff]  }
 0xa1e   : > { %v569_v62 = vpop.xlane.xlu1 %568  ;;  %v1831_v31 = vpop.permute.xlu0 %1830 }
 0xa1f   : > { %v573_v63 = vsub.f32 1.0, %v569_v62  ;;  %v1874_v36 = vsel %vm864_vm12, %v4110_v53, %v1831_v31  ;;  %v3612_v62 = vld [vmem:[%s3920_s29 + $0x2c] ss:$16 sps:$4 sm:$0xff]  }
 0xa21   : > { %v1891_v42 = vrot.slane %v573_v63, %v4007_v47 }
 0xa22   : > { %v1833_v28 = vpop.permute.xlu1 %1832  ;;  %v1847_v33 = vpop.permute.xlu0 %1846 }
 0xa23   : > { %v1879_v13 = vsel %vm1878_vm15, %v1874_v36, %v1847_v33  ;;  %v1875_v39 = vsel %vm864_vm12, %v4112_v55, %v1833_v28  ;;  %v3607_v28 = vld [vmem:[%s3920_s29 + $0x20] ss:$16 sps:$4 sm:$0xff]  }
 0xa26   : > { %v1835_v30 = vpop.permute.xlu1 %1834  ;;  %v1851_v35 = vpop.permute.xlu0 %1850 }
 0xa27   : > { %v1876_v53 = vsel %vm864_vm12, %v4118_v6, %v1835_v30  ;;  %v4281_v6 = vld [vmem:[%s3940_s2] sm:$0x3f] }
 0xa28   : > { %v1881_v55 = vsel %vm1878_vm15, %v1876_v53, %v1851_v35  ;;  %v3621_v53 = vld [vmem:[%s3920_s29 + $0x64] ss:$16 sps:$4 sm:$0xff]  }
 0xa2a   : > { %v1837_v32 = vpop.permute.xlu1 %1836 }
 0xa2b   : > { %v1877_v15 = vsel %vm864_vm12, %v4120_v8, %v1837_v32  ;;  %v1922_v8 = vrot.slane %v4281_v6, %v4007_v47 }
 0xa2e   : > { %v1849_v34 = vpop.permute.xlu1 %1848 }
 0xa2f   : > { %v1880_v43 = vsel %vm1878_vm15, %v1875_v39, %v1849_v34 }
 0xa32   : > { %v1853_v37 = vpop.permute.xlu1 %1852 }
 0xa33   : > { %v1882_v24 = vsel %vm1878_vm15, %v1877_v15, %v1853_v37  ;;  %v3627_v15 = vld [vmem:[%s3920_s29 + $0x84] ss:$16 sps:$4 sm:$0xff]  }
 0xac0   : > { %v1772_v16 = vpop.f32.mrb[28].mxu1 }
 0xac1   : > { %1862 = vrot.lane.b32.xlu0 %v1772_v16, %s3826_s3  ;;  %v3499_v17 = vpop.f32.mrb[29].mxu1  ;;  %v3795_v16 = vld [vmem:[%s4568_s9 + $0x10] sm:$0xff] }
 0xac2   : > { %v1775_v18 = vpop.f32.mrb[30].mxu1 }
 0xac3   : > { %1864 = vrot.lane.b32.xlu1 %v1775_v18, %s3826_s3  ;;  %v3500_v20 = vpop.f32.mrb[31].mxu1  ;;  %v3796_v18 = vld [vmem:[%s4568_s9 + $0x18] sm:$0xff] }
 0xac4   : > { %v3601_v20 = vld [vmem:[%s3920_s29] ss:$16 sps:$4 sm:$0xff]  }
 0xacc   : > { %v1819_v25 = vpop.f32.mrb[40].mxu0 }
 0xacd   : > { %1866 = vrot.lane.b32.xlu0 %v1819_v25, %s3826_s3  ;;  %v3505_v22 = vpop.f32.mrb[41].mxu0  ;;  %v3603_v25 = vld [vmem:[%s3920_s29 + $0x4] ss:$16 sps:$4 sm:$0xff]  }
 0xace   : > { %v1822_v26 = vpop.f32.mrb[42].mxu0  ;;  %v3604_v22 = vld [vmem:[%s3920_s29 + $0x8] ss:$16 sps:$4 sm:$0xff]   ;;  %2301 = vmatprep.subr.bf16.mxu0 %v3603_v25 }
 0xacf   : > { %1868 = vrot.lane.b32.xlu1 %v1822_v26, %s3826_s3  ;;  %v3506_v27 = vpop.f32.mrb[43].mxu0  ;;  %v3606_v26 = vld [vmem:[%s3920_s29 + $0xc] ss:$16 sps:$4 sm:$0xff]   ;;  %2302 = vmatpush1.bf16.msra.mxu0 %v3601_v20 }
 0xad0   : > { %v3609_v27 = vld [vmem:[%s3920_s29 + $0x24] ss:$16 sps:$4 sm:$0xff]   ;;  %2354 = vmatprep.subr.bf16.mxu1 %v3606_v26  ;;  %v2079_v26 = vsub.s32 3, %v4004_v46 }
 0xad1   : > { %2303 = vmatprep.subr.bf16.mxu0 %v3609_v27 }
 0xad3   : > { %2304 = vmatpush1.bf16.msra.mxu0 %v3607_v28 }
 0xb33   : > { %v1863_v14 = vpop.permute.xlu0 %1862 }
 0xb34   : > { %v1884_v41 = vsel %vm1883_vm0, %v1879_v13, %v1863_v14 }
 0xb35   : > { %v1865_v45 = vpop.permute.xlu1 %1864  ;;  %v1896_v51 = vmul.f32 %v1891_v42, %v1884_v41 }
 0xb36   : > { %v1885_v50 = vsel %vm1883_vm0, %v1880_v43, %v1865_v45 }
 0xb37   : > { %v1897_v52 = vmul.f32 %v1891_v42, %v1885_v50  ;;  %v3615_v50 = vld [vmem:[%s3920_s29 + $0x44] ss:$16 sps:$4 sm:$0xff]  }
 0xb38   : > { %2305 = vmatprep.subr.bf16.mxu0 %v3615_v50  ;;  %v3650_v50 = vld [vmem:[%s3925_s15 + $0xc0] sm:$0xff]  }
 0xb39   : > { %v1900_v54 = vpack.c.bf16 %v1897_v52, %v1896_v51  ;;  %v3618_v51 = vld [vmem:[%s3920_s29 + $0x4c] ss:$16 sps:$4 sm:$0xff]   ;;  %v3613_v52 = vld [vmem:[%s3920_s29 + $0x40] ss:$16 sps:$4 sm:$0xff]  }
 0xb3a   : > { %2306 = vmatpush1.bf16.msra.mxu0 %v3613_v52  ;;  %v3653_v52 = vld [vmem:[%s3925_s15 + $0x48] sm:$0xff]  }
 0xb3b   : > { %3523 = vmatprep.mubr.bf16.mxu1 %v1900_v54  ;;  %v3616_v54 = vld [vmem:[%s3920_s29 + $0x48] ss:$16 sps:$4 sm:$0xff]   ;;  %2307 = vmatprep.subr.bf16.mxu0 %v3621_v53 }
 0xb3c   : > { %v3655_v53 = vld [vmem:[%s3925_s15 + $0x8] sm:$0xff]  }
 0xb3f   : > { %v1867_v1 = vpop.permute.xlu0 %1866 }
 0xb40   : > { %v1886_v48 = vsel %vm1883_vm0, %v1881_v55, %v1867_v1  ;;  %v3619_v55 = vld [vmem:[%s3920_s29 + $0x60] ss:$16 sps:$4 sm:$0xff]   ;;  %v3622_v1 = vld [vmem:[%s3920_s29 + $0x68] ss:$16 sps:$4 sm:$0xff]  }
 0xb41   : > { %v1869_v38 = vpop.permute.xlu1 %1868  ;;  %v1898_v40 = vmul.f32 %v1895_v21, %v1886_v48  ;;  %2308 = vmatpush1.bf16.msra.mxu0 %v3619_v55  ;;  %v3630_v48 = vld [vmem:[%s3920_s29 + $0x8c] ss:$16 sps:$4 sm:$0xff]   ;;  %v3657_v55 = vld [vmem:[%s3925_s15 + $0x50] sm:$0xff]  }
 0xb42   : > { %v1887_v56 = vsel %vm1883_vm0, %v1882_v24, %v1869_v38  ;;  %v3628_v24 = vld [vmem:[%s3920_s29 + $0x88] ss:$16 sps:$4 sm:$0xff]   ;;  %2309 = vmatprep.subr.bf16.mxu0 %v3627_v15  ;;  %v3633_v38 = vld [vmem:[%s3920_s29 + $0xa4] ss:$16 sps:$4 sm:$0xff]  }
 0xb43   : > { %v1899_v57 = vmul.f32 %v1895_v21, %v1887_v56  ;;  %v3625_v21 = vld [vmem:[%s3920_s29 + $0x80] ss:$16 sps:$4 sm:$0xff]   ;;  %v3636_v56 = vld [vmem:[%s3920_s29 + $0xac] ss:$16 sps:$4 sm:$0xff]  }
 0xb44   : > { %v3659_v15 = vld [vmem:[%s3925_s15 + $0x10] sm:$0xff]  }
 0xb45   : > { %v1901_v58 = vpack.c.bf16 %v1899_v57, %v1898_v40  ;;  %2310 = vmatpush1.bf16.msra.mxu0 %v3625_v21  ;;  %v3631_v40 = vld [vmem:[%s3920_s29 + $0xa0] ss:$16 sps:$4 sm:$0xff]   ;;  %v3634_v57 = vld [vmem:[%s3920_s29 + $0xa8] ss:$16 sps:$4 sm:$0xff]  }
 0xb46   : > { %2311 = vmatprep.subr.bf16.mxu0 %v3633_v38  ;;  %v3661_v21 = vld [vmem:[%s3925_s15 + $0x58] sm:$0xff]  }
 0xb47   : > { %3524 = vmatmul.mubr.bf16.vlgmr.msra.gmra.mrb[32].mxu1 %v1901_v58  ;;  %v3639_v58 = vld [vmem:[%s3920_s29 + $0xc4] ss:$16 sps:$4 sm:$0xff]   ;;  %v3663_v38 = vld [vmem:[%s3925_s15 + $0x18] sm:$0xff]  }
 0xb48   : > { %2386 = vmatprep.mubr.bf16.mxu1 %v3823_v23  ;;  %2355 = vmatpush1.bf16.msra.mxu1 %v3604_v22  ;;  %v2072_v22 = vrot.slane %v4281_v6, %v4073_v5 }
 0xb49   : > { %2356 = vmatprep.subr.bf16.mxu1 %v3612_v62  ;;  %2312 = vmatpush1.bf16.msra.mxu0 %v3631_v40  ;;  %v3665_v40 = vld [vmem:[%s3925_s15 + $0x60] sm:$0xff]  }
 0xb4a   : > { %2313 = vmatprep.subr.bf16.mxu0 %v3639_v58  ;;  %v3667_v58 = vld [vmem:[%s3925_s15 + $0x20] sm:$0xff]  }
 0xb4c   : > { %2357 = vmatpush1.bf16.msra.mxu1 %v3610_v29 }
 0xb4d   : > { %2358 = vmatprep.subr.bf16.mxu1 %v3618_v51  ;;  %v3651_v51 = vld [vmem:[%s3925_s15] sm:$0xff]  }
 0xb50   : > { %2359 = vmatpush1.bf16.msra.mxu1 %v3616_v54  ;;  %v3654_v54 = vld [vmem:[%s3925_s15 + $0xc8] sm:$0xff]  }
 0xb51   : > { %2360 = vmatprep.subr.bf16.mxu1 %v3624_v0  ;;  %v3656_v0 = vld [vmem:[%s3925_s15 + $0x88] sm:$0xff]  }
 0xb54   : > { %2361 = vmatpush1.bf16.msra.mxu1 %v3622_v1  ;;  %v3658_v1 = vld [vmem:[%s3925_s15 + $0xd0] sm:$0xff]  }
 0xb55   : > { %2362 = vmatprep.subr.bf16.mxu1 %v3630_v48  ;;  %v3660_v48 = vld [vmem:[%s3925_s15 + $0x90] sm:$0xff]  }
 0xb58   : > { %2363 = vmatpush1.bf16.msra.mxu1 %v3628_v24  ;;  %v3662_v24 = vld [vmem:[%s3925_s15 + $0xd8] sm:$0xff]  }
 0xb59   : > { %2364 = vmatprep.subr.bf16.mxu1 %v3636_v56  ;;  %v3664_v56 = vld [vmem:[%s3925_s15 + $0x98] sm:$0xff]  }
 0xb5c   : > { %2365 = vmatpush1.bf16.msra.mxu1 %v3634_v57  ;;  %v3666_v57 = vld [vmem:[%s3925_s15 + $0xe0] sm:$0xff]  }
 0xc1a   : > { %v3525_v59 = vpop.f32.mrb[32].mxu1 }
 0xc1b   : > { %v2005_v60 = vpop.f32.mrb[33].mxu1  ;;  %v2014_v4 = vadd.f32 %v3525_v59, %v1922_v8  ;;  %v3637_v59 = vld [vmem:[%s3920_s29 + $0xc0] ss:$16 sps:$4 sm:$0xff]  }
 0xc1c   : > { %v2006_v61 = vadd.f32 %v2005_v60, %v1922_v8  ;;  %v3526_v2 = vpop.f32.mrb[34].mxu1  ;;  %v3640_v60 = vld [vmem:[%s3920_s29 + $0xc8] ss:$16 sps:$4 sm:$0xff]   ;;  %2314 = vmatpush1.bf16.msra.mxu0 %v3637_v59 }
 0xc1d   : > { %v2008_v3 = vpop.f32.mrb[35].mxu1  ;;  %v2017_v12 = vadd.f32 %v3526_v2, %v1922_v8  ;;  %v2022_v17 = vadd.f32 %v3795_v16, %v2014_v4  ;;  %v3648_v2 = vld [vmem:[%s3920_s29 + $0xec] ss:$16 sps:$4 sm:$0xff]   ;;  %v3646_v4 = vld [vmem:[%s3920_s29 + $0xe8] ss:$16 sps:$4 sm:$0xff]  }
 0xc1e   : > { %v2009_v7 = vadd.f32 %v2008_v3, %v1922_v8  ;;  %v2020_v10 = vadd.f32 %v3793_v9, %v2006_v61  ;;  %v3642_v8 = vld [vmem:[%s3920_s29 + $0xcc] ss:$16 sps:$4 sm:$0xff]   ;;  %v3645_v61 = vld [vmem:[%s3920_s29 + $0xe4] ss:$16 sps:$4 sm:$0xff]   ;;  %v3643_v3 = vld [vmem:[%s3920_s29 + $0xe0] ss:$16 sps:$4 sm:$0xff]  }
 0xc1f   : > { %v2023_v19 = vadd.f32 %v3796_v18, %v2017_v12  ;;  %2366 = vmatprep.subr.bf16.mxu1 %v3642_v8  ;;  %2315 = vmatprep.subr.bf16.mxu0 %v3645_v61  ;;  %v3668_v8 = vld [vmem:[%s3925_s15 + $0xa0] sm:$0xff]   ;;  %v3669_v59 = vld [vmem:[%s3925_s15 + $0x68] sm:$0xff]  }
 0xc20   : > { %2024 = vadd.xlane.f32.xlu0 %v2020_v10  ;;  %v2021_v44 = vadd.f32 %v3794_v11, %v2009_v7  ;;  %2367 = vmatpush1.bf16.msra.mxu1 %v3640_v60  ;;  %v3670_v60 = vld [vmem:[%s3925_s15 + $0xe8] sm:$0xff]  }
 0xc21   : > { %2368 = vmatprep.subr.bf16.mxu1 %v3648_v2  ;;  %2316 = vmatpush1.bf16.msra.mxu0 %v3643_v3  ;;  %v3671_v61 = vld [vmem:[%s3925_s15 + $0x28] sm:$0xff]   ;;  %v3673_v3 = vld [vmem:[%s3925_s15 + $0x70] sm:$0xff]  }
 0xc22   : > { %2026 = vadd.xlane.f32.xlu1 %v2021_v44  ;;  %v3672_v2 = vld [vmem:[%s3925_s15 + $0xa8] sm:$0xff]  }
 0xc24   : > { %2028 = vadd.xlane.f32.xlu0 %v2022_v17  ;;  %2369 = vmatpush1.bf16.msra.mxu1 %v3646_v4  ;;  %v3674_v4 = vld [vmem:[%s3925_s15 + $0xf0] sm:$0xff]  }
 0xc25   : > { %3363 = vmatprep.subr.bf16.mxu1 %v3650_v50 }
 0xc28   : > { %2030 = vadd.xlane.f32.xlu0 %v2023_v19 }
 0xcad   : > { %v2025_v30 = vpop.xlane.xlu0 %2024 }
 0xcae   : > { %v2033_v31 = vmul.f32 0.0078125, %v2025_v30 }
 0xcaf   : > { %v2027_v32 = vpop.xlane.xlu1 %2026 }
 0xcb0   : > { %v4305_v33 = vsub.f32 %v2020_v10, %v2033_v31  ;;  %v2034_v34 = vmul.f32 0.0078125, %v2027_v32  ;;  %v2080_v31 = vrot.slane %v4281_v6, %v2079_v26 }
 0xcb1   : > { %v2029_v35 = vpop.xlane.xlu0 %2028 }
 0xcb2   : > { %v4307_v63 = vsub.f32 %v2021_v44, %v2034_v34  ;;  %v2035_v37 = vmul.f32 0.0078125, %v2029_v35  ;;  %v2041_v36 = vmul.f32 %v4305_v33, %v4305_v33 }
 0xcb4   : > { %v4311_v13 = vsub.f32 %v2022_v17, %v2035_v37  ;;  %2045 = vadd.xlane.f32.xlu0 %v2041_v36  ;;  %v2042_v14 = vmul.f32 %v4307_v63, %v4307_v63 }
 0xcb5   : > { %v2031_v39 = vpop.xlane.xlu0 %2030 }
 0xcb6   : > { %v2036_v41 = vmul.f32 0.0078125, %v2031_v39  ;;  %2047 = vadd.xlane.f32.xlu1 %v2042_v14  ;;  %v2043_v42 = vmul.f32 %v4311_v13, %v4311_v13 }
 0xcb8   : > { %v4317_v43 = vsub.f32 %v2023_v19, %v2036_v41  ;;  %2049 = vadd.xlane.f32.xlu0 %v2043_v42 }
 0xcba   : > { %v2044_v45 = vmul.f32 %v4317_v43, %v4317_v43 }
 0xcbc   : > { %2051 = vadd.xlane.f32.xlu1 %v2044_v45  ;;  %v3649_v45 = vld [vmem:[%s3925_s15 + $0x40] sm:$0xff]  }
 0xcbd   : > { %3335 = vmatprep.subr.bf16.mxu0 %v3649_v45 }
 0xd41   : > { %v2046_v7 = vpop.xlane.xlu0 %2045 }
 0xd42   : > { %v2053_v9 = vmul.f32 0.0078125, %v2046_v7  ;;  %v3675_v7 = vld [vmem:[%s3925_s15 + $0x30] sm:$0xff]  }
 0xd43   : > { %v2048_v10 = vpop.xlane.xlu1 %2047 }
 0xd44   : > { %v2057_v11 = vadd.f32 1e-05, %v2053_v9  ;;  %v2054_v44 = vmul.f32 0.0078125, %v2048_v10  ;;  %v3676_v9 = vld [vmem:[%s3925_s15 + $0xb0] sm:$0xff]   ;;  %v3677_v10 = vld [vmem:[%s3925_s15 + $0x78] sm:$0xff]  }
 0xd45   : > { %v2050_v12 = vpop.xlane.xlu0 %2049 }
 0xd46   : > { %3745 = vrsqrt.f32 %v2057_v11  ;;  %v2058_v16 = vadd.f32 1e-05, %v2054_v44  ;;  %v2055_v17 = vmul.f32 0.0078125, %v2050_v12  ;;  %v3678_v11 = vld [vmem:[%s3925_s15 + $0xf8] sm:$0xff]  }
 0xd47   : > { %v3679_v44 = vld [vmem:[%s3925_s15 + $0x38] sm:$0xff]  }
 0xd48   : > { %3747 = vrsqrt.f32 %v2058_v16  ;;  %v2059_v18 = vadd.f32 1e-05, %v2055_v17  ;;  %v3680_v12 = vld [vmem:[%s3925_s15 + $0xb8] sm:$0xff]   ;;  %v2119_v16 = vld [vmem:[%s3935_s25] sm:$0xf] }
 0xd49   : > { %v2052_v19 = vpop.xlane.xlu1 %2051  ;;  %v4403_v17 = vrot.slane %v2119_v16, %v4007_v47 }
 0xd4a   : > { %3749 = vrsqrt.f32 %v2059_v18  ;;  %v2056_v20 = vmul.f32 0.0078125, %v2052_v19  ;;  %v4406_v18 = vrot.slane %v2119_v16, %v4073_v5 }
 0xd4c   : > { %v2060_v25 = vadd.f32 1e-05, %v2056_v20 }
 0xd4e   : > { %3751 = vrsqrt.f32 %v2060_v25  ;;  %v4409_v25 = vrot.slane %v2119_v16, %v4013_v49 }
 0xd50   : > { %v3746_v27 = vpop.eup %3745 }
 0xd51   : > { %v2065_v62 = vmul.f32 %v3746_v27, %v4305_v33 }
 0xd52   : > { %v3748_v28 = vpop.eup %3747 }
 0xd53   : > { %v2066_v29 = vmul.f32 %v3748_v28, %v4307_v63  ;;  %v2073_v30 = vmul.f32 %v2072_v22, %v2065_v62 }
 0xd54   : > { %v3750_v32 = vpop.eup %3749 }
 0xd55   : > { %v2074_v34 = vmul.f32 %v2072_v22, %v2066_v29  ;;  %v4353_v35 = vadd.f32 %v2080_v31, %v2073_v30  ;;  %v2067_v36 = vmul.f32 %v3750_v32, %v4311_v13  ;;  %v4415_v29 = vrot.slane %v2119_v16, %v2079_v26 }
 0xd57   : > { %v4355_v37 = vadd.f32 %v2080_v31, %v2074_v34  ;;  %v2075_v39 = vmul.f32 %v2072_v22, %v2067_v36 }
 0xd58   : > { %v3752_v14 = vpop.eup %3751 }
 0xd59   : > { %v2085_v33 = vpack.c.bf16 %v4355_v37, %v4353_v35  ;;  %v2068_v63 = vmul.f32 %v3752_v14, %v4317_v43  ;;  %v4365_v42 = vadd.f32 %v2080_v31, %v2075_v39 }
 0xd5b   : > { %2334 = vmatmul.mubr.bf16.vlgmr.msra.gmra.mrb[44].mxu0 %v2085_v33  ;;  %2387 = vmatmul.mubr.bf16.vlgmr.msra.gmra.mrb[36].mxu1 %v2085_v33  ;;  %v2076_v41 = vmul.f32 %v2072_v22, %v2068_v63 }
 0xd5c   : > { %2343 = vmatprep.mubr.bf16.mxu0 %v3823_v23  ;;  %2396 = vmatprep.mubr.bf16.mxu1 %v3823_v23  ;;  %v3652_v23 = vld [vmem:[%s3925_s15 + $0x80] sm:$0xff]  }
 0xd5d   : > { %v4363_v13 = vadd.f32 %v2080_v31, %v2076_v41  ;;  %3336 = vmatpush3.bf16.msra.mxu0 %v3651_v51  ;;  %3364 = vmatpush3.bf16.msra.mxu1 %v3652_v23 }
 0xd5e   : > { %3337 = vmatprep.subr.bf16.mxu0 %v3653_v52  ;;  %3365 = vmatprep.subr.bf16.mxu1 %v3654_v54 }
 0xd5f   : > { %v2086_v43 = vpack.c.bf16 %v4363_v13, %v4365_v42 }
 0xd61   : > { %3338 = vmatpush3.bf16.msra.mxu0 %v3655_v53  ;;  %3366 = vmatpush3.bf16.msra.mxu1 %v3656_v0 }
 0xd62   : > { %3339 = vmatprep.subr.bf16.mxu0 %v3657_v55  ;;  %3367 = vmatprep.subr.bf16.mxu1 %v3658_v1 }
 0xd63   : > { %2344 = vmatmul.mubr.bf16.gmra.mrb[48].mxu0 %v2086_v43  ;;  %2397 = vmatmul.mubr.bf16.gmra.mrb[40].mxu1 %v2086_v43 }
 0xd65   : > { %3340 = vmatpush3.bf16.msra.mxu0 %v3659_v15  ;;  %3368 = vmatpush3.bf16.msra.mxu1 %v3660_v48 }
 0xd66   : > { %3341 = vmatprep.subr.bf16.mxu0 %v3661_v21  ;;  %3369 = vmatprep.subr.bf16.mxu1 %v3662_v24 }
 0xd69   : > { %3342 = vmatpush3.bf16.msra.mxu0 %v3663_v38  ;;  %3370 = vmatpush3.bf16.msra.mxu1 %v3664_v56 }
 0xd6a   : > { %3343 = vmatprep.subr.bf16.mxu0 %v3665_v40  ;;  %3371 = vmatprep.subr.bf16.mxu1 %v3666_v57 }
 0xd6d   : > { %3344 = vmatpush3.bf16.msra.mxu0 %v3667_v58  ;;  %3372 = vmatpush3.bf16.msra.mxu1 %v3668_v8 }
 0xd6e   : > { %3345 = vmatprep.subr.bf16.mxu0 %v3669_v59  ;;  %3373 = vmatprep.subr.bf16.mxu1 %v3670_v60 }
 0xd71   : > { %3346 = vmatpush3.bf16.msra.mxu0 %v3671_v61  ;;  %3374 = vmatpush3.bf16.msra.mxu1 %v3672_v2 }
 0xd72   : > { %3347 = vmatprep.subr.bf16.mxu0 %v3673_v3  ;;  %3375 = vmatprep.subr.bf16.mxu1 %v3674_v4 }
 0xd75   : > { %3348 = vmatpush3.bf16.msra.mxu0 %v3675_v7  ;;  %3376 = vmatpush3.bf16.msra.mxu1 %v3676_v9 }
 0xd76   : > { %3349 = vmatprep.subr.bf16.mxu0 %v3677_v10  ;;  %3377 = vmatprep.subr.bf16.mxu1 %v3678_v11 }
 0xd79   : > { %3350 = vmatpush3.bf16.msra.mxu0 %v3679_v44  ;;  %3378 = vmatpush3.bf16.msra.mxu1 %v3680_v12 }
 0xe2e   : > { %v2335_v19 = vpop.f32.mrb[44].mxu0  ;;  %v2388_v20 = vpop.f32.mrb[36].mxu1 }
 0xe2f   : > { %v2336_v22 = vadd.f32 %v2335_v19, %v4403_v17  ;;  %v2389_v27 = vadd.f32 %v2388_v20, %v4406_v18  ;;  %v2337_v62 = vpop.f32.mrb[45].mxu0  ;;  %v2390_v28 = vpop.f32.mrb[37].mxu1 }
 0xe30   : > { %v2339_v47 = vpop.f32.mrb[46].mxu0  ;;  %v2392_v30 = vpop.f32.mrb[38].mxu1  ;;  %v4418_v32 = vadd.f32 %v2337_v62, %v4409_v25  ;;  %v4428_v26 = vadd.f32 %v2390_v28, %v4415_v29 }
 0xe31   : > { %v2423_v31 = vmul.f32 0.044715, %v2336_v22  ;;  %v2425_v5 = vmul.f32 0.044715, %v2389_v27  ;;  %v2340_v34 = vadd.f32 %v2339_v47, %v4403_v17  ;;  %v4422_v36 = vadd.f32 %v2392_v30, %v4406_v18  ;;  %v2341_v14 = vpop.f32.mrb[47].mxu0  ;;  %v2394_v33 = vpop.f32.mrb[39].mxu1 }
 0xe32   : > { %v4425_v41 = vadd.f32 %v2341_v14, %v4409_v25  ;;  %v4431_v45 = vadd.f32 %v2394_v33, %v4415_v29  ;;  %v4433_v50 = vmul.f32 0.5, %v2336_v22  ;;  %v2424_v54 = vmul.f32 0.044715, %v4418_v32 }
 0xe33   : > { %v2439_v63 = vmul.f32 %v2423_v31, %v2336_v22  ;;  %v2441_v39 = vmul.f32 %v2425_v5, %v2389_v27  ;;  %v2427_v43 = vmul.f32 0.044715, %v2340_v34  ;;  %v2429_v52 = vmul.f32 0.044715, %v4422_v36 }
 0xe34   : > { %v2428_v0 = vmul.f32 0.044715, %v4425_v41  ;;  %v4438_v48 = vmul.f32 0.5, %v2389_v27  ;;  %v2426_v40 = vmul.f32 0.044715, %v4428_v26  ;;  %v2440_v9 = vmul.f32 %v2424_v54, %v4418_v32 }
 0xe35   : > { %v2455_v51 = vmul.f32 %v2439_v63, %v2336_v22  ;;  %v2457_v23 = vmul.f32 %v2441_v39, %v2389_v27  ;;  %v2443_v53 = vmul.f32 %v2427_v43, %v2340_v34  ;;  %v2445_v24 = vmul.f32 %v2429_v52, %v4422_v36 }
 0xe36   : > { %v2345_v55 = vpop.f32.mrb[48].mxu0  ;;  %v2398_v1 = vpop.f32.mrb[40].mxu1  ;;  %v2430_v58 = vmul.f32 0.044715, %v4431_v45  ;;  %v2444_v11 = vmul.f32 %v2428_v0, %v4425_v41  ;;  %v2442_v20 = vmul.f32 %v2426_v40, %v4428_v26  ;;  %v2456_v31 = vmul.f32 %v2440_v9, %v4418_v32 }
 0xe37   : > { %v2471_v15 = vadd.f32 %v2455_v51, %v2336_v22  ;;  %v2473_v21 = vadd.f32 %v2457_v23, %v2389_v27  ;;  %v2347_v38 = vpop.f32.mrb[49].mxu0  ;;  %v2400_v56 = vpop.f32.mrb[41].mxu1  ;;  %v2459_v57 = vmul.f32 %v2443_v53, %v2340_v34  ;;  %v4444_v8 = vadd.f32 %v2345_v55, %v4403_v17 }
 0xe38   : > { %v2349_v59 = vpop.f32.mrb[50].mxu0  ;;  %v2402_v60 = vpop.f32.mrb[42].mxu1  ;;  %v2461_v3 = vmul.f32 %v2445_v24, %v4422_v36  ;;  %v4450_v44 = vadd.f32 %v2398_v1, %v4406_v18  ;;  %v4455_v19 = vadd.f32 %v2347_v38, %v4409_v25  ;;  %v2446_v27 = vmul.f32 %v2430_v58, %v4431_v45 }
 0xe39   : > { %v2487_v61 = vmul.f32 0.7978846, %v2471_v15  ;;  %v2489_v2 = vmul.f32 0.7978846, %v2473_v21  ;;  %v2351_v4 = vpop.f32.mrb[51].mxu0  ;;  %v2404_v7 = vpop.f32.mrb[43].mxu1  ;;  %v2475_v10 = vadd.f32 %v2459_v57, %v2340_v34  ;;  %v4461_v47 = vadd.f32 %v2400_v56, %v4415_v29 }
 0xe3a   : > { %v2477_v12 = vadd.f32 %v2461_v3, %v4422_v36  ;;  %v2431_v16 = vmul.f32 0.044715, %v4444_v8  ;;  %v2432_v28 = vmul.f32 0.044715, %v4455_v19  ;;  %v4464_v30 = vadd.f32 %v2349_v59, %v4403_v17 }
 0xe3b   : > { %3753 = vtanh.f32 %v2487_v61  ;;  %v2491_v22 = vmul.f32 0.7978846, %v2475_v10  ;;  %v2460_v5 = vmul.f32 %v2444_v11, %v4425_v41  ;;  %v4469_v14 = vadd.f32 %v2402_v60, %v4406_v18 }
 0xe3c   : > { %3755 = vtanh.f32 %v2489_v2  ;;  %v2493_v62 = vmul.f32 0.7978846, %v2477_v12  ;;  %v2447_v33 = vmul.f32 %v2431_v16, %v4444_v8  ;;  %v2433_v63 = vmul.f32 0.044715, %v4450_v44 }
 0xe3d   : > { %3757 = vtanh.f32 %v2491_v22  ;;  %v2434_v39 = vmul.f32 0.044715, %v4461_v47  ;;  %v2411_v43 = vmul.f32 0.5, %v2340_v34  ;;  %v2448_v51 = vmul.f32 %v2432_v28, %v4455_v19 }
 0xe3e   : > { %3759 = vtanh.f32 %v2493_v62  ;;  %v4476_v17 = vadd.f32 %v2351_v4, %v4409_v25  ;;  %v4479_v23 = vadd.f32 %v2404_v7, %v4415_v29  ;;  %v2458_v52 = vmul.f32 %v2442_v20, %v4428_v26 }
 0xe3f   : > { %v2462_v18 = vmul.f32 %v2446_v27, %v4431_v45  ;;  %v2435_v54 = vmul.f32 0.044715, %v4464_v30  ;;  %v2437_v53 = vmul.f32 0.044715, %v4469_v14  ;;  %v2450_v0 = vmul.f32 %v2434_v39, %v4461_v47 }
 0xe40   : > { %v2436_v34 = vmul.f32 0.044715, %v4476_v17  ;;  %v2438_v55 = vmul.f32 0.044715, %v4479_v23  ;;  %v2472_v25 = vadd.f32 %v2456_v31, %v4418_v32  ;;  %v2413_v1 = vmul.f32 0.5, %v4422_v36 }
 0xe41   : > { %v2463_v29 = vmul.f32 %v2447_v33, %v4444_v8  ;;  %v2449_v15 = vmul.f32 %v2433_v63, %v4450_v44  ;;  %v2476_v21 = vadd.f32 %v2460_v5, %v4425_v41  ;;  %v2464_v24 = vmul.f32 %v2448_v51, %v4455_v19 }
 0xe42   : > { %v2452_v38 = vmul.f32 %v2436_v34, %v4476_v17  ;;  %v2454_v56 = vmul.f32 %v2438_v55, %v4479_v23  ;;  %v2488_v40 = vmul.f32 0.7978846, %v2472_v25  ;;  %v2451_v58 = vmul.f32 %v2435_v54, %v4464_v30 }
 0xe43   : > { %v2492_v59 = vmul.f32 0.7978846, %v2476_v21  ;;  %v2474_v60 = vadd.f32 %v2458_v52, %v4428_v26  ;;  %v2478_v36 = vadd.f32 %v2462_v18, %v4431_v45  ;;  %v2466_v2 = vmul.f32 %v2450_v0, %v4461_v47 }
 0xe44   : > { %v2453_v3 = vmul.f32 %v2437_v53, %v4469_v14  ;;  %v2468_v4 = vmul.f32 %v2452_v38, %v4476_v17  ;;  %3761 = vtanh.f32 %v2488_v40  ;;  %v2465_v12 = vmul.f32 %v2449_v15, %v4450_v44 }
 0xe45   : > { %v3754_v57 = vpop.eup %3753  ;;  %3763 = vtanh.f32 %v2492_v59  ;;  %v2490_v7 = vmul.f32 0.7978846, %v2474_v60  ;;  %v2494_v9 = vmul.f32 0.7978846, %v2478_v36  ;;  %v2470_v16 = vmul.f32 %v2454_v56, %v4479_v23 }
 0xe46   : > { %v3756_v61 = vpop.eup %3755  ;;  %v2519_v10 = vadd.f32 1.0, %v3754_v57  ;;  %v2480_v22 = vadd.f32 %v2464_v24, %v4455_v19  ;;  %v2467_v62 = vmul.f32 %v2451_v58, %v4464_v30  ;;  %v2484_v31 = vadd.f32 %v2468_v4, %v4476_v17 }
 0xe47   : > { %v3758_v11 = vpop.eup %3757  ;;  %v2521_v20 = vadd.f32 1.0, %v3756_v61  ;;  %3765 = vtanh.f32 %v2490_v7  ;;  %v2469_v5 = vmul.f32 %v2453_v3, %v4469_v14  ;;  %v2482_v18 = vadd.f32 %v2466_v2, %v4461_v47 }
 0xe48   : > { %v3760_v27 = vpop.eup %3759  ;;  %v2523_v28 = vadd.f32 1.0, %v3758_v11  ;;  %3767 = vtanh.f32 %v2494_v9  ;;  %v2496_v63 = vmul.f32 0.7978846, %v2480_v22  ;;  %v2535_v39 = vmul.f32 %v2519_v10, %v4433_v50 }
 0xe49   : > { %v2525_v33 = vadd.f32 1.0, %v3760_v27  ;;  %v2500_v52 = vmul.f32 0.7978846, %v2484_v31  ;;  %v2537_v54 = vmul.f32 %v2521_v20, %v4438_v48  ;;  %v2486_v0 = vadd.f32 %v2470_v16, %v4479_v23 }
 0xe4a   : > { %v2539_v51 = vmul.f32 %v2523_v28, %v2411_v43  ;;  %3769 = vtanh.f32 %v2496_v63  ;;  %v2498_v55 = vmul.f32 0.7978846, %v2482_v18  ;;  %v2479_v21 = vadd.f32 %v2463_v29, %v4444_v8 }
 0xe4b   : > { %v2541_v53 = vmul.f32 %v2525_v33, %v2413_v1  ;;  %3771 = vtanh.f32 %v2500_v52  ;;  %v2502_v15 = vmul.f32 0.7978846, %v2486_v0  ;;  %v2483_v24 = vadd.f32 %v2467_v62, %v4464_v30 }
 0xe4c   : > { %v2551_v34 = vpack.c.bf16 %v2539_v51, %v2535_v39  ;;  %3773 = vtanh.f32 %v2498_v55  ;;  %v2481_v50 = vadd.f32 %v2465_v12, %v4450_v44  ;;  %v2495_v38 = vmul.f32 0.7978846, %v2479_v21 }
 0xe4d   : > { %v2553_v25 = vpack.c.bf16 %v2541_v53, %v2537_v54  ;;  %3775 = vtanh.f32 %v2502_v15  ;;  %v2499_v48 = vmul.f32 0.7978846, %v2483_v24  ;;  %v2485_v1 = vadd.f32 %v2469_v5, %v4469_v14 }
 0xe4e   : > { %v3762_v43 = vpop.eup %3761  ;;  %v2408_v40 = vmul.f32 0.5, %v4418_v32  ;;  %v2497_v58 = vmul.f32 0.7978846, %v2481_v50  ;;  %v2412_v59 = vmul.f32 0.5, %v4425_v41  ;;  %3777 = vtanh.f32 %v2495_v38 }
 0xe4f   : > { %v3764_v56 = vpop.eup %3763  ;;  %v2520_v57 = vadd.f32 1.0, %v3762_v43  ;;  %v2501_v29 = vmul.f32 0.7978846, %v2485_v1  ;;  %3779 = vtanh.f32 %v2499_v48  ;;  %v2410_v7 = vmul.f32 0.5, %v4428_v26 }
 0xe50   : > { %v2524_v60 = vadd.f32 1.0, %v3764_v56  ;;  %3781 = vtanh.f32 %v2497_v58  ;;  %v2414_v9 = vmul.f32 0.5, %v4431_v45  ;;  %v2416_v22 = vmul.f32 0.5, %v4455_v19 }
 0xe51   : > { %v3766_v36 = vpop.eup %3765  ;;  %v2536_v2 = vmul.f32 %v2520_v57, %v2408_v40  ;;  %3783 = vtanh.f32 %v2501_v29  ;;  %v2420_v27 = vmul.f32 0.5, %v4476_v17  ;;  %v2418_v63 = vmul.f32 0.5, %v4461_v47 }
 0xe52   : > { %v3768_v61 = vpop.eup %3767  ;;  %v2540_v3 = vmul.f32 %v2524_v60, %v2412_v59  ;;  %v2522_v4 = vadd.f32 1.0, %v3766_v36  ;;  %v2422_v39 = vmul.f32 0.5, %v4479_v23  ;;  %v2419_v55 = vmul.f32 0.5, %v4464_v30 }
 0xe53   : > { %v2526_v10 = vadd.f32 1.0, %v3768_v61  ;;  %v2417_v47 = vmul.f32 0.5, %v4450_v44  ;;  %v2626_v30 = vrot.slane %v4281_v6, %v4013_v49 }
 0xe54   : > { %v3770_v32 = vpop.eup %3769  ;;  %v2552_v11 = vpack.c.bf16 %v2540_v3, %v2536_v2  ;;  %v2538_v41 = vmul.f32 %v2522_v4, %v2410_v7 }
 0xe55   : > { %v3772_v12 = vpop.eup %3771  ;;  %v2542_v16 = vmul.f32 %v2526_v10, %v2414_v9  ;;  %v2528_v20 = vadd.f32 1.0, %v3770_v32 }
 0xe56   : > { %2851 = vmatprep.mubr.bf16.mxu0 %v2552_v11  ;;  %v2532_v62 = vadd.f32 1.0, %v3772_v12  ;;  %v3774_v28 = vpop.eup %3773 }
 0xe57   : > { %v2554_v31 = vpack.c.bf16 %v2542_v16, %v2538_v41  ;;  %2852 = vmatmul.mubr.bf16.vlgmr.msra.gmra.mrb[52].mxu0 %v2551_v34  ;;  %v3776_v26 = vpop.eup %3775  ;;  %v2544_v5 = vmul.f32 %v2528_v20, %v2416_v22  ;;  %v2530_v33 = vadd.f32 1.0, %v3774_v28  ;;  %v2415_v34 = vmul.f32 0.5, %v4444_v8 }
 0xe58   : > { %v2548_v45 = vmul.f32 %v2532_v62, %v2420_v27  ;;  %v2534_v51 = vadd.f32 1.0, %v3776_v26  ;;  %v3778_v52 = vpop.eup %3777 }
 0xe59   : > { %2900 = vmatprep.mubr.bf16.mxu1 %v2554_v31  ;;  %v3780_v19 = vpop.eup %3779  ;;  %v2546_v54 = vmul.f32 %v2530_v33, %v2418_v63  ;;  %v2527_v53 = vadd.f32 1.0, %v3778_v52 }
 0xe5a   : > { %2901 = vmatmul.mubr.bf16.vlgmr.msra.gmra.mrb[44].mxu1 %v2553_v25  ;;  %v2556_v18 = vpack.c.bf16 %v2548_v45, %v2544_v5  ;;  %v2550_v17 = vmul.f32 %v2534_v51, %v2422_v39  ;;  %v3782_v0 = vpop.eup %3781  ;;  %v2531_v15 = vadd.f32 1.0, %v3780_v19  ;;  %v2421_v25 = vmul.f32 0.5, %v4469_v14 }
 0xe5b   : > { %v3784_v21 = vpop.eup %3783  ;;  %v2529_v23 = vadd.f32 1.0, %v3782_v0  ;;  %v2543_v50 = vmul.f32 %v2527_v53, %v2415_v34 }
 0xe5c   : > { %2859 = vmatprep.mubr.bf16.mxu0 %v2556_v18  ;;  %v2558_v24 = vpack.c.bf16 %v2550_v17, %v2546_v54  ;;  %v2547_v43 = vmul.f32 %v2531_v15, %v2419_v55  ;;  %v2533_v38 = vadd.f32 1.0, %v3784_v21 }
 0xe5d   : > { %v2545_v1 = vmul.f32 %v2529_v23, %v2417_v47 }
 0xe5e   : > { %2908 = vmatprep.mubr.bf16.mxu1 %v2558_v24  ;;  %v2555_v48 = vpack.c.bf16 %v2547_v43, %v2543_v50  ;;  %v2549_v56 = vmul.f32 %v2533_v38, %v2421_v25 }
 0xe60   : > { %2860 = vmatmul.mubr.bf16.gmra.mrb[56].mxu0 %v2555_v48  ;;  %v2557_v40 = vpack.c.bf16 %v2549_v56, %v2545_v1  ;;  %v2967_v1 = vsub.s32 4, %v4004_v46 }
 0xe62   : > { %2909 = vmatmul.mubr.bf16.gmra.mrb[48].mxu1 %v2557_v40 }
 0xf2a   : > { %v3351_v8 = vpop.f32.mrb[52].mxu0 }
 0xf2b   : > { %v3352_v57 = vpop.f32.mrb[53].mxu0 }
 0xf2c   : > { %v3353_v58 = vadd.f32 %v3352_v57, %v3351_v8  ;;  %v3354_v44 = vpop.f32.mrb[54].mxu0  ;;  %v2975_v8 = vsub.s32 5, %v4004_v46 }
 0xf2d   : > { %v3379_v59 = vpop.f32.mrb[44].mxu1  ;;  %v3355_v60 = vpop.f32.mrb[55].mxu0 }
 0xf2e   : > { %v2854_v29 = vadd.f32 %v3353_v58, %v2626_v30  ;;  %v3380_v36 = vpop.f32.mrb[45].mxu1  ;;  %v3356_v14 = vadd.f32 %v3355_v60, %v3354_v44  ;;  %v2968_v44 = vrot.slane %v4281_v6, %v2967_v1 }
 0xf2f   : > { %v3381_v61 = vadd.f32 %v3380_v36, %v3379_v59  ;;  %v3382_v2 = vpop.f32.mrb[46].mxu1 }
 0xf30   : > { %v2857_v3 = vadd.f32 %v3356_v14, %v2626_v30  ;;  %v3383_v4 = vpop.f32.mrb[47].mxu1 }
 0xf31   : > { %v2903_v7 = vadd.f32 %v3381_v61, %v2854_v29  ;;  %v3384_v9 = vadd.f32 %v3383_v4, %v3382_v2  ;;  %v2976_v29 = vrot.slane %v4281_v6, %v2975_v8 }
 0xf33   : > { %v2906_v10 = vadd.f32 %v3384_v9, %v2857_v3  ;;  %v2917_v32 = vadd.f32 %v2903_v7, %v4353_v35  ;;  %v3357_v11 = vpop.f32.mrb[56].mxu0 }
 0xf34   : > { %v3358_v12 = vpop.f32.mrb[57].mxu0 }
 0xf35   : > { %2921 = vadd.xlane.f32.xlu0 %v2917_v32  ;;  %v2918_v49 = vadd.f32 %v2906_v10, %v4355_v37  ;;  %v3385_v41 = vpop.f32.mrb[48].mxu1  ;;  %v3359_v16 = vadd.f32 %v3358_v12, %v3357_v11  ;;  %v3360_v20 = vpop.f32.mrb[58].mxu0 }
 0xf36   : > { %v3386_v22 = vpop.f32.mrb[49].mxu1  ;;  %v3361_v27 = vpop.f32.mrb[59].mxu0 }
 0xf37   : > { %2923 = vadd.xlane.f32.xlu1 %v2918_v49  ;;  %v2862_v62 = vadd.f32 %v3359_v16, %v2626_v30  ;;  %v3387_v28 = vadd.f32 %v3386_v22, %v3385_v41  ;;  %v3388_v31 = vpop.f32.mrb[50].mxu1  ;;  %v3362_v26 = vadd.f32 %v3361_v27, %v3360_v20 }
 0xf38   : > { %v3389_v5 = vpop.f32.mrb[51].mxu1 }
 0xf39   : > { %v2911_v45 = vadd.f32 %v3387_v28, %v2862_v62  ;;  %v2865_v33 = vadd.f32 %v3362_v26, %v2626_v30  ;;  %v3390_v63 = vadd.f32 %v3389_v5, %v3388_v31 }
 0xf3b   : > { %v2914_v35 = vadd.f32 %v3390_v63, %v2865_v33  ;;  %v2919_v39 = vadd.f32 %v2911_v45, %v4365_v42 }
 0xf3d   : > { %2925 = vadd.xlane.f32.xlu0 %v2919_v39  ;;  %v2920_v37 = vadd.f32 %v2914_v35, %v4363_v13 }
 0xf3f   : > { %2927 = vadd.xlane.f32.xlu1 %v2920_v37 }
 0xfc2   : > { %v2922_v51 = vpop.xlane.xlu0 %2921 }
 0xfc3   : > { %v2929_v52 = vmul.f32 0.0078125, %v2922_v51 }
 0xfc4   : > { %v2924_v18 = vpop.xlane.xlu1 %2923 }
 0xfc5   : > { %v2933_v19 = vsub.f32 %v2917_v32, %v2929_v52  ;;  %v2930_v54 = vmul.f32 0.0078125, %v2924_v18 }
 0xfc7   : > { %v2934_v17 = vsub.f32 %v2918_v49, %v2930_v54  ;;  %v2937_v53 = vmul.f32 %v2933_v19, %v2933_v19 }
 0xfc9   : > { %2941 = vadd.xlane.f32.xlu0 %v2937_v53  ;;  %v2938_v0 = vmul.f32 %v2934_v17, %v2934_v17 }
 0xfca   : > { %v2926_v34 = vpop.xlane.xlu0 %2925 }
 0xfcb   : > { %2943 = vadd.xlane.f32.xlu1 %v2938_v0  ;;  %v2931_v55 = vmul.f32 0.0078125, %v2926_v34 }
 0xfcc   : > { %v2928_v15 = vpop.xlane.xlu1 %2927 }
 0xfcd   : > { %v2935_v21 = vsub.f32 %v2919_v39, %v2931_v55  ;;  %v2932_v24 = vmul.f32 0.0078125, %v2928_v15 }
 0xfcf   : > { %v2936_v42 = vsub.f32 %v2920_v37, %v2932_v24  ;;  %v2939_v47 = vmul.f32 %v2935_v21, %v2935_v21 }
 0xfd1   : > { %2945 = vadd.xlane.f32.xlu0 %v2939_v47  ;;  %v2940_v13 = vmul.f32 %v2936_v42, %v2936_v42 }
 0xfd3   : > { %2947 = vadd.xlane.f32.xlu1 %v2940_v13 }
0x1056   : > { %v2942_v23 = vpop.xlane.xlu0 %2941 }
0x1057   : > { %v2949_v50 = vmul.f32 0.0078125, %v2942_v23 }
0x1058   : > { %v2944_v43 = vpop.xlane.xlu1 %2943 }
0x1059   : > { %v2953_v25 = vadd.f32 1e-05, %v2949_v50  ;;  %v2950_v38 = vmul.f32 0.0078125, %v2944_v43 }
0x105b   : > { %3785 = vrsqrt.f32 %v2953_v25  ;;  %v2954_v48 = vadd.f32 1e-05, %v2950_v38 }
0x105d   : > { %3787 = vrsqrt.f32 %v2954_v48 }
0x105e   : > { %v2946_v56 = vpop.xlane.xlu0 %2945 }
0x105f   : > { %v2951_v40 = vmul.f32 0.0078125, %v2946_v56 }
0x1060   : > { %v2948_v30 = vpop.xlane.xlu1 %2947 }
0x1061   : > { %v2955_v57 = vadd.f32 1e-05, %v2951_v40  ;;  %v2952_v58 = vmul.f32 0.0078125, %v2948_v30 }
0x1063   : > { %3789 = vrsqrt.f32 %v2955_v57  ;;  %v2956_v60 = vadd.f32 1e-05, %v2952_v58 }
0x1065   : > { %v3786_v59 = vpop.eup %3785  ;;  %3791 = vrsqrt.f32 %v2956_v60 }
0x1066   : > { %v2961_v36 = vmul.f32 %v3786_v59, %v2933_v19 }
0x1067   : > { %v3788_v14 = vpop.eup %3787 }
0x1068   : > { %v2969_v61 = vmul.f32 %v2968_v44, %v2961_v36  ;;  %v2962_v2 = vmul.f32 %v3788_v14, %v2934_v17 }
0x106a   : > { %v2977_v3 = vadd.f32 %v2976_v29, %v2969_v61  ;;  %v2970_v4 = vmul.f32 %v2968_v44, %v2962_v2 }
0x106c   : > { %2981 = vst [vmem:[%s4568_s9] sm:$0xff] %v2977_v3  ;;  %v2978_v46 = vadd.f32 %v2976_v29, %v2970_v4 }
0x106d   : > { %v3790_v7 = vpop.eup %3789 }
0x106e   : > { %2982 = vst [vmem:[%s4568_s9 + $0x8] sm:$0xff] %v2978_v46  ;;  %v2963_v9 = vmul.f32 %v3790_v7, %v2935_v21 }
0x106f   : > { %v3792_v10 = vpop.eup %3791 }
0x1070   : > { %v2971_v6 = vmul.f32 %v2968_v44, %v2963_v9  ;;  %v2964_v32 = vmul.f32 %v3792_v10, %v2936_v42 }
0x1072   : > { %v2979_v11 = vadd.f32 %v2976_v29, %v2971_v6  ;;  %v2972_v49 = vmul.f32 %v2968_v44, %v2964_v32 }
0x1074   : > { %2983 = vst [vmem:[%s4568_s9 + $0x10] sm:$0xff] %v2979_v11  ;;  %v2980_v12 = vadd.f32 %v2976_v29, %v2972_v49 }
0x1076   : > { %2984 = vst [vmem:[%s4568_s9 + $0x18] sm:$0xff] %v2980_v12 }
0x1077 PF: > { %s19_s11 = sadd.s32 1, %s3819_s11   ;;  %s4575_s30 = smov %s3815_s10 }
0x1078   : > { %p16_p6 = scmp.ge.s32.totalorder %s19_s11, 4   ;;  %s4576_s10 = smov %s4578_s12 }
0x107a   :  { %18 = sbr.rel (!%p16_p6) target bundleno = 4 (0x4), region = 114 }

</bundles_post_ra>
